<compile_context>
chip_gen: v7x
topology: tpu7x:2x2x1
jax: 0.10.0
libtpu: 0.0.40
codegen_flags: <defaults>
</compile_context>

<pallas_src>
import functools

import numpy as np
import jax
import jax.numpy as jnp
from jax import lax
from jax.experimental import pallas as pl
from jax.experimental.pallas import tpu as pltpu


# Tap order matches HWIO weights reshaped to [9, Cin, Cout]: k = (dy+1)*3 + (dx+1).
_OFFSETS = tuple((dy, dx) for dy in (-1, 0, 1) for dx in (-1, 0, 1))


# ------------------------------ fused kernel ------------------------------

def _generator_kernel(*refs, init_size, init_dim, n_blocks, out_ch):
    """Per-sample fused forward (one grid step == one batch element).

    refs = [z(1,1,K), lin_w(K,F), lin_b(1,F)]
         + [conv_wT(9,Cout,Cin), conv_b(Cout,1), masks(9,N)] * (n_blocks+1)
         + [upsample_mat(N,4N)] * n_blocks
         + [out(1,out_ch,h*h)]
    """
    n_conv = n_blocks + 1
    z_ref, lw_ref, lb_ref = refs[0], refs[1], refs[2]
    conv_refs = refs[3:3 + 3 * n_conv]
    up_refs = refs[3 + 3 * n_conv:3 + 3 * n_conv + n_blocks]
    o_ref = refs[3 + 3 * n_conv + n_blocks]

    S, C = init_size, init_dim
    N = S * S

    # ---- Linear: [1, K] @ [K, C*S*S]; columns are already in the PyTorch
    # reshape order (c, y, x), so no weight permutation is needed. -------------
    x_flat = jnp.dot(z_ref[0], lw_ref[...],
                     preferred_element_type=jnp.float32) + lb_ref[...]   # [1, C*N]

    # Channel-major conversion [1, C*N] -> [C, N] via one-hot row placement
    # (lane slices + broadcast-multiplies only; avoids minor-dim reshapes).
    ch = lax.broadcasted_iota(jnp.int32, (C, 1), 0)
    x = None
    for c in range(C):
        piece = (ch == c).astype(jnp.float32) * x_flat[:, c * N:(c + 1) * N]
        x = piece if x is None else x + piece                            # [C, N]

    for i in range(n_conv):
        w_ref = conv_refs[3 * i]        # [9, Cout, Cin]  per-tap, transposed
        b_ref = conv_refs[3 * i + 1]    # [Cout, 1]
        m_ref = conv_refs[3 * i + 2]    # [9, N] 0/1 boundary masks
        Cout = w_ref.shape[1]
        masks = m_ref[...]

        # 3x3 SAME conv = sum over 9 taps of Wk^T @ (masked, shifted) input,
        # all on the flat row-major (y, x) spatial axis kept in lanes.
        acc = None
        for k, (dy, dx) in enumerate(_OFFSETS):
            if (dy, dx) == (0, 0):
                xs = x
            else:
                # out[l] needs in[l + dy*S + dx]; wrap / row-crossing positions
                # are exactly the ones zeroed by the boundary mask.
                xs = jnp.roll(x, -(dy * S + dx), axis=1) * masks[k:k + 1, :]
            t = jnp.dot(w_ref[k], xs, preferred_element_type=jnp.float32)
            acc = t if acc is None else acc + t
        y = acc + b_ref[...]                                             # [Cout, N]

        if i < n_blocks:
            y = jnp.maximum(y, 0.0)                                      # ReLU
            # 2x nearest upsample as one matmul with a constant 0/1 expansion
            # matrix: [Cout, N] @ [N, 4N] -> [Cout, 4N]; no relayouts.
            x = jnp.dot(y, up_refs[i][...], preferred_element_type=jnp.float32)
            S, N, C = 2 * S, 4 * N, Cout
        else:
            # [out_ch, h*h] is already row-major NCHW for this sample.
            o_ref[0] = jnp.tanh(y)


# --------------------------- wrapper-side constants ---------------------------

def _conv_tap_weights(w):
    """HWIO [3,3,Cin,Cout] -> per-tap transposed [9, Cout, Cin]."""
    cin, cout = w.shape[2], w.shape[3]
    return jnp.transpose(w.reshape(9, cin, cout), (0, 2, 1))


def _boundary_masks(S):
    """[9, S*S] 0/1 masks: valid(l) iff the (dy,dx) neighbour of l is in-bounds."""
    n = S * S
    row = np.arange(n) // S
    col = np.arange(n) % S
    m = np.zeros((9, n), np.float32)
    for k, (dy, dx) in enumerate(_OFFSETS):
        ok = ((row + dy >= 0) & (row + dy < S) &
              (col + dx >= 0) & (col + dx < S))
        m[k] = ok.astype(np.float32)
    return jnp.asarray(m)


def _upsample_matrix(S):
    """[S*S, 4*S*S] 0/1 matrix implementing nearest-neighbour 2x upsampling."""
    n2 = 4 * S * S
    p = np.arange(n2)
    pr, pc = p // (2 * S), p % (2 * S)
    src = (pr // 2) * S + (pc // 2)
    u = np.zeros((S * S, n2), np.float32)
    u[src, p] = 1.0
    return jnp.asarray(u)


# ------------------------------ wrapper ------------------------------

def generator_forward(z, params, cfg):
    """z: [B, n_latent] -> [B, out_ch, h, h] (NCHW), one fused pallas_call."""
    B, n_latent = z.shape
    C0, S0 = cfg["init_dim"], cfg["init_size"]
    n_blocks, out_ch = cfg["n_blocks"], cfg["out_ch"]
    h = S0 * 2 ** n_blocks
    n_conv = n_blocks + 1
    F = C0 * S0 * S0

    z3 = z.reshape(B, 1, n_latent)
    lin_b = params["lin_b"].reshape(1, F)

    inputs = [z3, params["lin_w"], lin_b]
    in_specs = [
        pl.BlockSpec((1, 1, n_latent), lambda g: (g, 0, 0)),
        pl.BlockSpec((n_latent, F), lambda g: (0, 0)),
        pl.BlockSpec((1, F), lambda g: (0, 0)),
    ]

    conv_inputs, conv_specs = [], []
    up_inputs, up_specs = [], []
    S = S0
    for i in range(n_conv):
        w, bias = params["convs"][i]                     # HWIO [3,3,Cin,Cout]
        cin, cout = w.shape[2], w.shape[3]
        conv_inputs += [_conv_tap_weights(w), bias.reshape(cout, 1),
                        _boundary_masks(S)]
        conv_specs += [
            pl.BlockSpec((9, cout, cin), lambda g: (0, 0, 0)),
            pl.BlockSpec((cout, 1), lambda g: (0, 0)),
            pl.BlockSpec((9, S * S), lambda g: (0, 0)),
        ]
        if i < n_blocks:
            up_inputs.append(_upsample_matrix(S))
            up_specs.append(pl.BlockSpec((S * S, 4 * S * S), lambda g: (0, 0)))
            S *= 2

    inputs = inputs + conv_inputs + up_inputs
    in_specs = in_specs + conv_specs + up_specs

    kernel = functools.partial(_generator_kernel, init_size=S0, init_dim=C0,
                               n_blocks=n_blocks, out_ch=out_ch)

    out = pl.pallas_call(
        kernel,
        out_shape=jax.ShapeDtypeStruct((B, out_ch, h * h), jnp.float32),
        grid=(B,),
        in_specs=in_specs,
        out_specs=pl.BlockSpec((1, out_ch, h * h), lambda g: (g, 0, 0)),
        compiler_params=pltpu.CompilerParams(
            dimension_semantics=("parallel",)),
    )(*inputs)
    # Free, contiguous reshape back to NCHW.
    return out.reshape(B, out_ch, h, h)


# --------------------------- parameters / reference ---------------------------

def init_generator_params(key, h, out_ch, n_latent, cur_dim, n_blocks=2):
    init_size = h // 2 ** n_blocks
    cfg = dict(init_dim=cur_dim, init_size=init_size, n_blocks=n_blocks,
               out_ch=out_ch)
    keys = jax.random.split(key, 2 + 2 * (n_blocks + 1))
    lin_out = cur_dim * init_size ** 2
    params = {
        "lin_w": 0.05 * jax.random.normal(keys[0], (n_latent, lin_out), jnp.float32),
        "lin_b": 0.05 * jax.random.normal(keys[1], (lin_out,), jnp.float32),
    }
    convs = []
    c = cur_dim
    ki = 2
    for _ in range(n_blocks):
        w = 0.05 * jax.random.normal(keys[ki], (3, 3, c, c * 2), jnp.float32)   # HWIO
        b = 0.05 * jax.random.normal(keys[ki + 1], (c * 2,), jnp.float32)
        convs.append((w, b))
        c *= 2
        ki += 2
    w = 0.05 * jax.random.normal(keys[ki], (3, 3, c, out_ch), jnp.float32)
    b = 0.05 * jax.random.normal(keys[ki + 1], (out_ch,), jnp.float32)
    convs.append((w, b))
    params["convs"] = convs
    return params, cfg


def _reference_forward(z, params, cfg):
    B = z.shape[0]
    x = z @ params["lin_w"] + params["lin_b"]
    y = x.reshape(B, cfg["init_dim"], cfg["init_size"], cfg["init_size"])
    y = jnp.transpose(y, (0, 2, 3, 1))
    for i in range(cfg["n_blocks"]):
        w, b = params["convs"][i]
        y = lax.conv_general_dilated(
            y, w, (1, 1), "SAME",
            dimension_numbers=("NHWC", "HWIO", "NHWC")) + b
        y = jnp.maximum(y, 0.0)
        y = jnp.repeat(jnp.repeat(y, 2, axis=1), 2, axis=2)
    w, b = params["convs"][cfg["n_blocks"]]
    y = lax.conv_general_dilated(
        y, w, (1, 1), "SAME",
        dimension_numbers=("NHWC", "HWIO", "NHWC")) + b
    y = jnp.tanh(y)
    return jnp.transpose(y, (0, 3, 1, 2))


if __name__ == "__main__":
    # h=16, out_ch=3, n_latent=8, cur_dim=4, n_blocks=2 => init_size=4,
    # output [B, 3, 16, 16].
    h, out_ch, n_latent, cur_dim, n_blocks = 16, 3, 8, 4, 2
    B = 2

    key = jax.random.PRNGKey(0)
    pkey, zkey = jax.random.split(key)
    params, cfg = init_generator_params(pkey, h, out_ch, n_latent, cur_dim, n_blocks)
    z = jax.random.normal(zkey, (B, n_latent), jnp.float32)

    fwd = jax.jit(functools.partial(generator_forward, cfg=cfg))
    out = jax.block_until_ready(fwd(z, params))
    assert out.shape == (B, out_ch, h, h), out.shape

    ref = jax.block_until_ready(_reference_forward(z, params, cfg))
    assert jnp.allclose(out, ref, atol=1e-4, rtol=1e-4), "mismatch vs reference"

    print("KERNEL_OK")
</pallas_src>

<mosaic_0001>
module attributes {stable_mosaic.version = 11 : i64} {
  func.func @_generator_kernel(%arg0: i32, %arg1: memref<1x1x8xf32, #tpu.memory_space<vmem>>, %arg2: memref<8x64xf32, #tpu.memory_space<vmem>>, %arg3: memref<1x64xf32, #tpu.memory_space<vmem>>, %arg4: memref<9x8x4xf32, #tpu.memory_space<vmem>>, %arg5: memref<8x1xf32, #tpu.memory_space<vmem>>, %arg6: memref<9x16xf32, #tpu.memory_space<vmem>>, %arg7: memref<9x16x8xf32, #tpu.memory_space<vmem>>, %arg8: memref<16x1xf32, #tpu.memory_space<vmem>>, %arg9: memref<9x64xf32, #tpu.memory_space<vmem>>, %arg10: memref<9x3x16xf32, #tpu.memory_space<vmem>>, %arg11: memref<3x1xf32, #tpu.memory_space<vmem>>, %arg12: memref<9x256xf32, #tpu.memory_space<vmem>>, %arg13: memref<16x64xf32, #tpu.memory_space<vmem>>, %arg14: memref<64x256xf32, #tpu.memory_space<vmem>>, %arg15: memref<1x3x256xf32, #tpu.memory_space<vmem>>) attributes {dimension_semantics = [#tpu.dimension_semantics<parallel>], iteration_bounds = array<i64: 2>, scalar_prefetch = 0 : i64, scratch_operands = 0 : i64, tpu.core_type = #tpu.core_type<tc>, window_params = [{transform_indices = @transform_0, window_bounds = array<i64: 1, 1, 8>}, {pipeline_mode = #tpu.pipeline_mode<synchronous>, transform_indices = @transform_1, window_bounds = array<i64: 8, 64>}, {pipeline_mode = #tpu.pipeline_mode<synchronous>, transform_indices = @transform_2, window_bounds = array<i64: 1, 64>}, {pipeline_mode = #tpu.pipeline_mode<synchronous>, transform_indices = @transform_3, window_bounds = array<i64: 9, 8, 4>}, {pipeline_mode = #tpu.pipeline_mode<synchronous>, transform_indices = @transform_4, window_bounds = array<i64: 8, 1>}, {pipeline_mode = #tpu.pipeline_mode<synchronous>, transform_indices = @transform_5, window_bounds = array<i64: 9, 16>}, {pipeline_mode = #tpu.pipeline_mode<synchronous>, transform_indices = @transform_6, window_bounds = array<i64: 9, 16, 8>}, {pipeline_mode = #tpu.pipeline_mode<synchronous>, transform_indices = @transform_7, window_bounds = array<i64: 16, 1>}, {pipeline_mode = #tpu.pipeline_mode<synchronous>, transform_indices = @transform_8, window_bounds = array<i64: 9, 64>}, {pipeline_mode = #tpu.pipeline_mode<synchronous>, transform_indices = @transform_9, window_bounds = array<i64: 9, 3, 16>}, {pipeline_mode = #tpu.pipeline_mode<synchronous>, transform_indices = @transform_10, window_bounds = array<i64: 3, 1>}, {pipeline_mode = #tpu.pipeline_mode<synchronous>, transform_indices = @transform_11, window_bounds = array<i64: 9, 256>}, {pipeline_mode = #tpu.pipeline_mode<synchronous>, transform_indices = @transform_12, window_bounds = array<i64: 16, 64>}, {pipeline_mode = #tpu.pipeline_mode<synchronous>, transform_indices = @transform_13, window_bounds = array<i64: 64, 256>}, {transform_indices = @transform_14, window_bounds = array<i64: 1, 3, 256>}]} {
    %c0 = arith.constant 0 : index
    %c0_0 = arith.constant 0 : index
    %c0_1 = arith.constant 0 : index
    %0 = vector.load %arg1[%c0, %c0_0, %c0_1] : memref<1x1x8xf32, #tpu.memory_space<vmem>>, vector<1x1x8xf32>
    %1 = vector.shape_cast %0 : vector<1x1x8xf32> to vector<1x8xf32>
    %c0_2 = arith.constant 0 : index
    %c0_3 = arith.constant 0 : index
    %2 = vector.load %arg2[%c0_2, %c0_3] : memref<8x64xf32, #tpu.memory_space<vmem>>, vector<8x64xf32>
    %cst = arith.constant dense<0.000000e+00> : vector<1x64xf32>
    %3 = tpu.matmul %1, %2, %cst {dimension_numbers = #tpu.dot_dimension_numbers<[1], [0], [0], [1], [0, 0, 1, 1], [], []>} : vector<1x8xf32>, vector<8x64xf32>, vector<1x64xf32> -> vector<1x64xf32>
    %c0_4 = arith.constant 0 : index
    %c0_5 = arith.constant 0 : index
    %4 = vector.load %arg3[%c0_4, %c0_5] : memref<1x64xf32, #tpu.memory_space<vmem>>, vector<1x64xf32>
    %5 = arith.addf %3, %4 : vector<1x64xf32>
    %6 = tpu.iota {dimensions = array<i32: 0>} : vector<4x1xi32>
    %c0_i32 = arith.constant 0 : i32
    %7 = vector.broadcast %c0_i32 : i32 to vector<4x1xi32>
    %8 = arith.cmpi eq, %6, %7 : vector<4x1xi32>
    %9 = arith.extui %8 : vector<4x1xi1> to vector<4x1xi32>
    %10 = arith.sitofp %9 : vector<4x1xi32> to vector<4x1xf32>
    %11 = vector.extract_strided_slice %5 {offsets = [0, 0], sizes = [1, 16], strides = [1, 1]} : vector<1x64xf32> to vector<1x16xf32>
    %12 = vector.broadcast %10 : vector<4x1xf32> to vector<4x16xf32>
    %13 = vector.broadcast %11 : vector<1x16xf32> to vector<4x16xf32>
    %14 = arith.mulf %12, %13 : vector<4x16xf32>
    %c1_i32 = arith.constant 1 : i32
    %15 = vector.broadcast %c1_i32 : i32 to vector<4x1xi32>
    %16 = arith.cmpi eq, %6, %15 : vector<4x1xi32>
    %17 = arith.extui %16 : vector<4x1xi1> to vector<4x1xi32>
    %18 = arith.sitofp %17 : vector<4x1xi32> to vector<4x1xf32>
    %19 = vector.extract_strided_slice %5 {offsets = [0, 16], sizes = [1, 16], strides = [1, 1]} : vector<1x64xf32> to vector<1x16xf32>
    %20 = vector.broadcast %18 : vector<4x1xf32> to vector<4x16xf32>
    %21 = vector.broadcast %19 : vector<1x16xf32> to vector<4x16xf32>
    %22 = arith.mulf %20, %21 : vector<4x16xf32>
    %23 = arith.addf %14, %22 : vector<4x16xf32>
    %c2_i32 = arith.constant 2 : i32
    %24 = vector.broadcast %c2_i32 : i32 to vector<4x1xi32>
    %25 = arith.cmpi eq, %6, %24 : vector<4x1xi32>
    %26 = arith.extui %25 : vector<4x1xi1> to vector<4x1xi32>
    %27 = arith.sitofp %26 : vector<4x1xi32> to vector<4x1xf32>
    %28 = vector.extract_strided_slice %5 {offsets = [0, 32], sizes = [1, 16], strides = [1, 1]} : vector<1x64xf32> to vector<1x16xf32>
    %29 = vector.broadcast %27 : vector<4x1xf32> to vector<4x16xf32>
    %30 = vector.broadcast %28 : vector<1x16xf32> to vector<4x16xf32>
    %31 = arith.mulf %29, %30 : vector<4x16xf32>
    %32 = arith.addf %23, %31 : vector<4x16xf32>
    %c3_i32 = arith.constant 3 : i32
    %33 = vector.broadcast %c3_i32 : i32 to vector<4x1xi32>
    %34 = arith.cmpi eq, %6, %33 : vector<4x1xi32>
    %35 = arith.extui %34 : vector<4x1xi1> to vector<4x1xi32>
    %36 = arith.sitofp %35 : vector<4x1xi32> to vector<4x1xf32>
    %37 = vector.extract_strided_slice %5 {offsets = [0, 48], sizes = [1, 16], strides = [1, 1]} : vector<1x64xf32> to vector<1x16xf32>
    %38 = vector.broadcast %36 : vector<4x1xf32> to vector<4x16xf32>
    %39 = vector.broadcast %37 : vector<1x16xf32> to vector<4x16xf32>
    %40 = arith.mulf %38, %39 : vector<4x16xf32>
    %41 = arith.addf %32, %40 : vector<4x16xf32>
    %c0_6 = arith.constant 0 : index
    %c0_7 = arith.constant 0 : index
    %42 = vector.load %arg6[%c0_6, %c0_7] : memref<9x16xf32, #tpu.memory_space<vmem>>, vector<9x16xf32>
    %43 = vector.extract_strided_slice %41 {offsets = [0, 11], sizes = [4, 5], strides = [1, 1]} : vector<4x16xf32> to vector<4x5xf32>
    %44 = vector.extract_strided_slice %41 {offsets = [0, 0], sizes = [4, 11], strides = [1, 1]} : vector<4x16xf32> to vector<4x11xf32>
    %45 = tpu.concatenate %43, %44 in 1 : vector<4x5xf32>, vector<4x11xf32> -> vector<4x16xf32>
    %46 = vector.extract_strided_slice %42 {offsets = [0, 0], sizes = [1, 16], strides = [1, 1]} : vector<9x16xf32> to vector<1x16xf32>
    %47 = vector.broadcast %46 : vector<1x16xf32> to vector<4x16xf32>
    %48 = arith.mulf %45, %47 : vector<4x16xf32>
    %c0_8 = arith.constant 0 : index
    %c0_9 = arith.constant 0 : index
    %c0_10 = arith.constant 0 : index
    %49 = vector.load %arg4[%c0_8, %c0_9, %c0_10] : memref<9x8x4xf32, #tpu.memory_space<vmem>>, vector<1x8x4xf32>
    %50 = vector.shape_cast %49 : vector<1x8x4xf32> to vector<8x4xf32>
    %cst_11 = arith.constant dense<0.000000e+00> : vector<8x16xf32>
    %51 = tpu.matmul %50, %48, %cst_11 {dimension_numbers = #tpu.dot_dimension_numbers<[1], [0], [0], [1], [0, 0, 1, 1], [], []>} : vector<8x4xf32>, vector<4x16xf32>, vector<8x16xf32> -> vector<8x16xf32>
    %52 = vector.extract_strided_slice %41 {offsets = [0, 12], sizes = [4, 4], strides = [1, 1]} : vector<4x16xf32> to vector<4x4xf32>
    %53 = vector.extract_strided_slice %41 {offsets = [0, 0], sizes = [4, 12], strides = [1, 1]} : vector<4x16xf32> to vector<4x12xf32>
    %54 = tpu.concatenate %52, %53 in 1 : vector<4x4xf32>, vector<4x12xf32> -> vector<4x16xf32>
    %55 = vector.extract_strided_slice %42 {offsets = [1, 0], sizes = [1, 16], strides = [1, 1]} : vector<9x16xf32> to vector<1x16xf32>
    %56 = vector.broadcast %55 : vector<1x16xf32> to vector<4x16xf32>
    %57 = arith.mulf %54, %56 : vector<4x16xf32>
    %c1 = arith.constant 1 : index
    %c0_12 = arith.constant 0 : index
    %c0_13 = arith.constant 0 : index
    %58 = vector.load %arg4[%c1, %c0_12, %c0_13] : memref<9x8x4xf32, #tpu.memory_space<vmem>>, vector<1x8x4xf32>
    %59 = vector.shape_cast %58 : vector<1x8x4xf32> to vector<8x4xf32>
    %cst_14 = arith.constant dense<0.000000e+00> : vector<8x16xf32>
    %60 = tpu.matmul %59, %57, %cst_14 {dimension_numbers = #tpu.dot_dimension_numbers<[1], [0], [0], [1], [0, 0, 1, 1], [], []>} : vector<8x4xf32>, vector<4x16xf32>, vector<8x16xf32> -> vector<8x16xf32>
    %61 = arith.addf %51, %60 : vector<8x16xf32>
    %62 = vector.extract_strided_slice %41 {offsets = [0, 13], sizes = [4, 3], strides = [1, 1]} : vector<4x16xf32> to vector<4x3xf32>
    %63 = vector.extract_strided_slice %41 {offsets = [0, 0], sizes = [4, 13], strides = [1, 1]} : vector<4x16xf32> to vector<4x13xf32>
    %64 = tpu.concatenate %62, %63 in 1 : vector<4x3xf32>, vector<4x13xf32> -> vector<4x16xf32>
    %65 = vector.extract_strided_slice %42 {offsets = [2, 0], sizes = [1, 16], strides = [1, 1]} : vector<9x16xf32> to vector<1x16xf32>
    %66 = vector.broadcast %65 : vector<1x16xf32> to vector<4x16xf32>
    %67 = arith.mulf %64, %66 : vector<4x16xf32>
    %c2 = arith.constant 2 : index
    %c0_15 = arith.constant 0 : index
    %c0_16 = arith.constant 0 : index
    %68 = vector.load %arg4[%c2, %c0_15, %c0_16] : memref<9x8x4xf32, #tpu.memory_space<vmem>>, vector<1x8x4xf32>
    %69 = vector.shape_cast %68 : vector<1x8x4xf32> to vector<8x4xf32>
    %cst_17 = arith.constant dense<0.000000e+00> : vector<8x16xf32>
    %70 = tpu.matmul %69, %67, %cst_17 {dimension_numbers = #tpu.dot_dimension_numbers<[1], [0], [0], [1], [0, 0, 1, 1], [], []>} : vector<8x4xf32>, vector<4x16xf32>, vector<8x16xf32> -> vector<8x16xf32>
    %71 = arith.addf %61, %70 : vector<8x16xf32>
    %72 = vector.extract_strided_slice %41 {offsets = [0, 15], sizes = [4, 1], strides = [1, 1]} : vector<4x16xf32> to vector<4x1xf32>
    %73 = vector.extract_strided_slice %41 {offsets = [0, 0], sizes = [4, 15], strides = [1, 1]} : vector<4x16xf32> to vector<4x15xf32>
    %74 = tpu.concatenate %72, %73 in 1 : vector<4x1xf32>, vector<4x15xf32> -> vector<4x16xf32>
    %75 = vector.extract_strided_slice %42 {offsets = [3, 0], sizes = [1, 16], strides = [1, 1]} : vector<9x16xf32> to vector<1x16xf32>
    %76 = vector.broadcast %75 : vector<1x16xf32> to vector<4x16xf32>
    %77 = arith.mulf %74, %76 : vector<4x16xf32>
    %c3 = arith.constant 3 : index
    %c0_18 = arith.constant 0 : index
    %c0_19 = arith.constant 0 : index
    %78 = vector.load %arg4[%c3, %c0_18, %c0_19] : memref<9x8x4xf32, #tpu.memory_space<vmem>>, vector<1x8x4xf32>
    %79 = vector.shape_cast %78 : vector<1x8x4xf32> to vector<8x4xf32>
    %cst_20 = arith.constant dense<0.000000e+00> : vector<8x16xf32>
    %80 = tpu.matmul %79, %77, %cst_20 {dimension_numbers = #tpu.dot_dimension_numbers<[1], [0], [0], [1], [0, 0, 1, 1], [], []>} : vector<8x4xf32>, vector<4x16xf32>, vector<8x16xf32> -> vector<8x16xf32>
    %81 = arith.addf %71, %80 : vector<8x16xf32>
    %c4 = arith.constant 4 : index
    %c0_21 = arith.constant 0 : index
    %c0_22 = arith.constant 0 : index
    %82 = vector.load %arg4[%c4, %c0_21, %c0_22] : memref<9x8x4xf32, #tpu.memory_space<vmem>>, vector<1x8x4xf32>
    %83 = vector.shape_cast %82 : vector<1x8x4xf32> to vector<8x4xf32>
    %cst_23 = arith.constant dense<0.000000e+00> : vector<8x16xf32>
    %84 = tpu.matmul %83, %41, %cst_23 {dimension_numbers = #tpu.dot_dimension_numbers<[1], [0], [0], [1], [0, 0, 1, 1], [], []>} : vector<8x4xf32>, vector<4x16xf32>, vector<8x16xf32> -> vector<8x16xf32>
    %85 = arith.addf %81, %84 : vector<8x16xf32>
    %86 = vector.extract_strided_slice %41 {offsets = [0, 1], sizes = [4, 15], strides = [1, 1]} : vector<4x16xf32> to vector<4x15xf32>
    %87 = vector.extract_strided_slice %41 {offsets = [0, 0], sizes = [4, 1], strides = [1, 1]} : vector<4x16xf32> to vector<4x1xf32>
    %88 = tpu.concatenate %86, %87 in 1 : vector<4x15xf32>, vector<4x1xf32> -> vector<4x16xf32>
    %89 = vector.extract_strided_slice %42 {offsets = [5, 0], sizes = [1, 16], strides = [1, 1]} : vector<9x16xf32> to vector<1x16xf32>
    %90 = vector.broadcast %89 : vector<1x16xf32> to vector<4x16xf32>
    %91 = arith.mulf %88, %90 : vector<4x16xf32>
    %c5 = arith.constant 5 : index
    %c0_24 = arith.constant 0 : index
    %c0_25 = arith.constant 0 : index
    %92 = vector.load %arg4[%c5, %c0_24, %c0_25] : memref<9x8x4xf32, #tpu.memory_space<vmem>>, vector<1x8x4xf32>
    %93 = vector.shape_cast %92 : vector<1x8x4xf32> to vector<8x4xf32>
    %cst_26 = arith.constant dense<0.000000e+00> : vector<8x16xf32>
    %94 = tpu.matmul %93, %91, %cst_26 {dimension_numbers = #tpu.dot_dimension_numbers<[1], [0], [0], [1], [0, 0, 1, 1], [], []>} : vector<8x4xf32>, vector<4x16xf32>, vector<8x16xf32> -> vector<8x16xf32>
    %95 = arith.addf %85, %94 : vector<8x16xf32>
    %96 = vector.extract_strided_slice %41 {offsets = [0, 3], sizes = [4, 13], strides = [1, 1]} : vector<4x16xf32> to vector<4x13xf32>
    %97 = vector.extract_strided_slice %41 {offsets = [0, 0], sizes = [4, 3], strides = [1, 1]} : vector<4x16xf32> to vector<4x3xf32>
    %98 = tpu.concatenate %96, %97 in 1 : vector<4x13xf32>, vector<4x3xf32> -> vector<4x16xf32>
    %99 = vector.extract_strided_slice %42 {offsets = [6, 0], sizes = [1, 16], strides = [1, 1]} : vector<9x16xf32> to vector<1x16xf32>
    %100 = vector.broadcast %99 : vector<1x16xf32> to vector<4x16xf32>
    %101 = arith.mulf %98, %100 : vector<4x16xf32>
    %c6 = arith.constant 6 : index
    %c0_27 = arith.constant 0 : index
    %c0_28 = arith.constant 0 : index
    %102 = vector.load %arg4[%c6, %c0_27, %c0_28] : memref<9x8x4xf32, #tpu.memory_space<vmem>>, vector<1x8x4xf32>
    %103 = vector.shape_cast %102 : vector<1x8x4xf32> to vector<8x4xf32>
    %cst_29 = arith.constant dense<0.000000e+00> : vector<8x16xf32>
    %104 = tpu.matmul %103, %101, %cst_29 {dimension_numbers = #tpu.dot_dimension_numbers<[1], [0], [0], [1], [0, 0, 1, 1], [], []>} : vector<8x4xf32>, vector<4x16xf32>, vector<8x16xf32> -> vector<8x16xf32>
    %105 = arith.addf %95, %104 : vector<8x16xf32>
    %106 = vector.extract_strided_slice %41 {offsets = [0, 4], sizes = [4, 12], strides = [1, 1]} : vector<4x16xf32> to vector<4x12xf32>
    %107 = vector.extract_strided_slice %41 {offsets = [0, 0], sizes = [4, 4], strides = [1, 1]} : vector<4x16xf32> to vector<4x4xf32>
    %108 = tpu.concatenate %106, %107 in 1 : vector<4x12xf32>, vector<4x4xf32> -> vector<4x16xf32>
    %109 = vector.extract_strided_slice %42 {offsets = [7, 0], sizes = [1, 16], strides = [1, 1]} : vector<9x16xf32> to vector<1x16xf32>
    %110 = vector.broadcast %109 : vector<1x16xf32> to vector<4x16xf32>
    %111 = arith.mulf %108, %110 : vector<4x16xf32>
    %c7 = arith.constant 7 : index
    %c0_30 = arith.constant 0 : index
    %c0_31 = arith.constant 0 : index
    %112 = vector.load %arg4[%c7, %c0_30, %c0_31] : memref<9x8x4xf32, #tpu.memory_space<vmem>>, vector<1x8x4xf32>
    %113 = vector.shape_cast %112 : vector<1x8x4xf32> to vector<8x4xf32>
    %cst_32 = arith.constant dense<0.000000e+00> : vector<8x16xf32>
    %114 = tpu.matmul %113, %111, %cst_32 {dimension_numbers = #tpu.dot_dimension_numbers<[1], [0], [0], [1], [0, 0, 1, 1], [], []>} : vector<8x4xf32>, vector<4x16xf32>, vector<8x16xf32> -> vector<8x16xf32>
    %115 = arith.addf %105, %114 : vector<8x16xf32>
    %116 = vector.extract_strided_slice %41 {offsets = [0, 5], sizes = [4, 11], strides = [1, 1]} : vector<4x16xf32> to vector<4x11xf32>
    %117 = vector.extract_strided_slice %41 {offsets = [0, 0], sizes = [4, 5], strides = [1, 1]} : vector<4x16xf32> to vector<4x5xf32>
    %118 = tpu.concatenate %116, %117 in 1 : vector<4x11xf32>, vector<4x5xf32> -> vector<4x16xf32>
    %119 = vector.extract_strided_slice %42 {offsets = [8, 0], sizes = [1, 16], strides = [1, 1]} : vector<9x16xf32> to vector<1x16xf32>
    %120 = vector.broadcast %119 : vector<1x16xf32> to vector<4x16xf32>
    %121 = arith.mulf %118, %120 : vector<4x16xf32>
    %c8 = arith.constant 8 : index
    %c0_33 = arith.constant 0 : index
    %c0_34 = arith.constant 0 : index
    %122 = vector.load %arg4[%c8, %c0_33, %c0_34] : memref<9x8x4xf32, #tpu.memory_space<vmem>>, vector<1x8x4xf32>
    %123 = vector.shape_cast %122 : vector<1x8x4xf32> to vector<8x4xf32>
    %cst_35 = arith.constant dense<0.000000e+00> : vector<8x16xf32>
    %124 = tpu.matmul %123, %121, %cst_35 {dimension_numbers = #tpu.dot_dimension_numbers<[1], [0], [0], [1], [0, 0, 1, 1], [], []>} : vector<8x4xf32>, vector<4x16xf32>, vector<8x16xf32> -> vector<8x16xf32>
    %125 = arith.addf %115, %124 : vector<8x16xf32>
    %c0_36 = arith.constant 0 : index
    %c0_37 = arith.constant 0 : index
    %126 = vector.load %arg5[%c0_36, %c0_37] : memref<8x1xf32, #tpu.memory_space<vmem>>, vector<8x1xf32>
    %127 = vector.broadcast %126 : vector<8x1xf32> to vector<8x16xf32>
    %128 = arith.addf %125, %127 : vector<8x16xf32>
    %cst_38 = arith.constant 0.000000e+00 : f32
    %129 = vector.broadcast %cst_38 : f32 to vector<8x16xf32>
    %130 = arith.maximumf %128, %129 : vector<8x16xf32>
    %c0_39 = arith.constant 0 : index
    %c0_40 = arith.constant 0 : index
    %131 = vector.load %arg13[%c0_39, %c0_40] : memref<16x64xf32, #tpu.memory_space<vmem>>, vector<16x64xf32>
    %cst_41 = arith.constant dense<0.000000e+00> : vector<8x64xf32>
    %132 = tpu.matmul %130, %131, %cst_41 {dimension_numbers = #tpu.dot_dimension_numbers<[1], [0], [0], [1], [0, 0, 1, 1], [], []>} : vector<8x16xf32>, vector<16x64xf32>, vector<8x64xf32> -> vector<8x64xf32>
    %c0_42 = arith.constant 0 : index
    %c0_43 = arith.constant 0 : index
    %133 = vector.load %arg9[%c0_42, %c0_43] : memref<9x64xf32, #tpu.memory_space<vmem>>, vector<9x64xf32>
    %134 = vector.extract_strided_slice %132 {offsets = [0, 55], sizes = [8, 9], strides = [1, 1]} : vector<8x64xf32> to vector<8x9xf32>
    %135 = vector.extract_strided_slice %132 {offsets = [0, 0], sizes = [8, 55], strides = [1, 1]} : vector<8x64xf32> to vector<8x55xf32>
    %136 = tpu.concatenate %134, %135 in 1 : vector<8x9xf32>, vector<8x55xf32> -> vector<8x64xf32>
    %137 = vector.extract_strided_slice %133 {offsets = [0, 0], sizes = [1, 64], strides = [1, 1]} : vector<9x64xf32> to vector<1x64xf32>
    %138 = vector.broadcast %137 : vector<1x64xf32> to vector<8x64xf32>
    %139 = arith.mulf %136, %138 : vector<8x64xf32>
    %c0_44 = arith.constant 0 : index
    %c0_45 = arith.constant 0 : index
    %c0_46 = arith.constant 0 : index
    %140 = vector.load %arg7[%c0_44, %c0_45, %c0_46] : memref<9x16x8xf32, #tpu.memory_space<vmem>>, vector<1x16x8xf32>
    %141 = vector.shape_cast %140 : vector<1x16x8xf32> to vector<16x8xf32>
    %cst_47 = arith.constant dense<0.000000e+00> : vector<16x64xf32>
    %142 = tpu.matmul %141, %139, %cst_47 {dimension_numbers = #tpu.dot_dimension_numbers<[1], [0], [0], [1], [0, 0, 1, 1], [], []>} : vector<16x8xf32>, vector<8x64xf32>, vector<16x64xf32> -> vector<16x64xf32>
    %143 = vector.extract_strided_slice %132 {offsets = [0, 56], sizes = [8, 8], strides = [1, 1]} : vector<8x64xf32> to vector<8x8xf32>
    %144 = vector.extract_strided_slice %132 {offsets = [0, 0], sizes = [8, 56], strides = [1, 1]} : vector<8x64xf32> to vector<8x56xf32>
    %145 = tpu.concatenate %143, %144 in 1 : vector<8x8xf32>, vector<8x56xf32> -> vector<8x64xf32>
    %146 = vector.extract_strided_slice %133 {offsets = [1, 0], sizes = [1, 64], strides = [1, 1]} : vector<9x64xf32> to vector<1x64xf32>
    %147 = vector.broadcast %146 : vector<1x64xf32> to vector<8x64xf32>
    %148 = arith.mulf %145, %147 : vector<8x64xf32>
    %c1_48 = arith.constant 1 : index
    %c0_49 = arith.constant 0 : index
    %c0_50 = arith.constant 0 : index
    %149 = vector.load %arg7[%c1_48, %c0_49, %c0_50] : memref<9x16x8xf32, #tpu.memory_space<vmem>>, vector<1x16x8xf32>
    %150 = vector.shape_cast %149 : vector<1x16x8xf32> to vector<16x8xf32>
    %cst_51 = arith.constant dense<0.000000e+00> : vector<16x64xf32>
    %151 = tpu.matmul %150, %148, %cst_51 {dimension_numbers = #tpu.dot_dimension_numbers<[1], [0], [0], [1], [0, 0, 1, 1], [], []>} : vector<16x8xf32>, vector<8x64xf32>, vector<16x64xf32> -> vector<16x64xf32>
    %152 = arith.addf %142, %151 : vector<16x64xf32>
    %153 = vector.extract_strided_slice %132 {offsets = [0, 57], sizes = [8, 7], strides = [1, 1]} : vector<8x64xf32> to vector<8x7xf32>
    %154 = vector.extract_strided_slice %132 {offsets = [0, 0], sizes = [8, 57], strides = [1, 1]} : vector<8x64xf32> to vector<8x57xf32>
    %155 = tpu.concatenate %153, %154 in 1 : vector<8x7xf32>, vector<8x57xf32> -> vector<8x64xf32>
    %156 = vector.extract_strided_slice %133 {offsets = [2, 0], sizes = [1, 64], strides = [1, 1]} : vector<9x64xf32> to vector<1x64xf32>
    %157 = vector.broadcast %156 : vector<1x64xf32> to vector<8x64xf32>
    %158 = arith.mulf %155, %157 : vector<8x64xf32>
    %c2_52 = arith.constant 2 : index
    %c0_53 = arith.constant 0 : index
    %c0_54 = arith.constant 0 : index
    %159 = vector.load %arg7[%c2_52, %c0_53, %c0_54] : memref<9x16x8xf32, #tpu.memory_space<vmem>>, vector<1x16x8xf32>
    %160 = vector.shape_cast %159 : vector<1x16x8xf32> to vector<16x8xf32>
    %cst_55 = arith.constant dense<0.000000e+00> : vector<16x64xf32>
    %161 = tpu.matmul %160, %158, %cst_55 {dimension_numbers = #tpu.dot_dimension_numbers<[1], [0], [0], [1], [0, 0, 1, 1], [], []>} : vector<16x8xf32>, vector<8x64xf32>, vector<16x64xf32> -> vector<16x64xf32>
    %162 = arith.addf %152, %161 : vector<16x64xf32>
    %163 = vector.extract_strided_slice %132 {offsets = [0, 63], sizes = [8, 1], strides = [1, 1]} : vector<8x64xf32> to vector<8x1xf32>
    %164 = vector.extract_strided_slice %132 {offsets = [0, 0], sizes = [8, 63], strides = [1, 1]} : vector<8x64xf32> to vector<8x63xf32>
    %165 = tpu.concatenate %163, %164 in 1 : vector<8x1xf32>, vector<8x63xf32> -> vector<8x64xf32>
    %166 = vector.extract_strided_slice %133 {offsets = [3, 0], sizes = [1, 64], strides = [1, 1]} : vector<9x64xf32> to vector<1x64xf32>
    %167 = vector.broadcast %166 : vector<1x64xf32> to vector<8x64xf32>
    %168 = arith.mulf %165, %167 : vector<8x64xf32>
    %c3_56 = arith.constant 3 : index
    %c0_57 = arith.constant 0 : index
    %c0_58 = arith.constant 0 : index
    %169 = vector.load %arg7[%c3_56, %c0_57, %c0_58] : memref<9x16x8xf32, #tpu.memory_space<vmem>>, vector<1x16x8xf32>
    %170 = vector.shape_cast %169 : vector<1x16x8xf32> to vector<16x8xf32>
    %cst_59 = arith.constant dense<0.000000e+00> : vector<16x64xf32>
    %171 = tpu.matmul %170, %168, %cst_59 {dimension_numbers = #tpu.dot_dimension_numbers<[1], [0], [0], [1], [0, 0, 1, 1], [], []>} : vector<16x8xf32>, vector<8x64xf32>, vector<16x64xf32> -> vector<16x64xf32>
    %172 = arith.addf %162, %171 : vector<16x64xf32>
    %c4_60 = arith.constant 4 : index
    %c0_61 = arith.constant 0 : index
    %c0_62 = arith.constant 0 : index
    %173 = vector.load %arg7[%c4_60, %c0_61, %c0_62] : memref<9x16x8xf32, #tpu.memory_space<vmem>>, vector<1x16x8xf32>
    %174 = vector.shape_cast %173 : vector<1x16x8xf32> to vector<16x8xf32>
    %cst_63 = arith.constant dense<0.000000e+00> : vector<16x64xf32>
    %175 = tpu.matmul %174, %132, %cst_63 {dimension_numbers = #tpu.dot_dimension_numbers<[1], [0], [0], [1], [0, 0, 1, 1], [], []>} : vector<16x8xf32>, vector<8x64xf32>, vector<16x64xf32> -> vector<16x64xf32>
    %176 = arith.addf %172, %175 : vector<16x64xf32>
    %177 = vector.extract_strided_slice %132 {offsets = [0, 1], sizes = [8, 63], strides = [1, 1]} : vector<8x64xf32> to vector<8x63xf32>
    %178 = vector.extract_strided_slice %132 {offsets = [0, 0], sizes = [8, 1], strides = [1, 1]} : vector<8x64xf32> to vector<8x1xf32>
    %179 = tpu.concatenate %177, %178 in 1 : vector<8x63xf32>, vector<8x1xf32> -> vector<8x64xf32>
    %180 = vector.extract_strided_slice %133 {offsets = [5, 0], sizes = [1, 64], strides = [1, 1]} : vector<9x64xf32> to vector<1x64xf32>
    %181 = vector.broadcast %180 : vector<1x64xf32> to vector<8x64xf32>
    %182 = arith.mulf %179, %181 : vector<8x64xf32>
    %c5_64 = arith.constant 5 : index
    %c0_65 = arith.constant 0 : index
    %c0_66 = arith.constant 0 : index
    %183 = vector.load %arg7[%c5_64, %c0_65, %c0_66] : memref<9x16x8xf32, #tpu.memory_space<vmem>>, vector<1x16x8xf32>
    %184 = vector.shape_cast %183 : vector<1x16x8xf32> to vector<16x8xf32>
    %cst_67 = arith.constant dense<0.000000e+00> : vector<16x64xf32>
    %185 = tpu.matmul %184, %182, %cst_67 {dimension_numbers = #tpu.dot_dimension_numbers<[1], [0], [0], [1], [0, 0, 1, 1], [], []>} : vector<16x8xf32>, vector<8x64xf32>, vector<16x64xf32> -> vector<16x64xf32>
    %186 = arith.addf %176, %185 : vector<16x64xf32>
    %187 = vector.extract_strided_slice %132 {offsets = [0, 7], sizes = [8, 57], strides = [1, 1]} : vector<8x64xf32> to vector<8x57xf32>
    %188 = vector.extract_strided_slice %132 {offsets = [0, 0], sizes = [8, 7], strides = [1, 1]} : vector<8x64xf32> to vector<8x7xf32>
    %189 = tpu.concatenate %187, %188 in 1 : vector<8x57xf32>, vector<8x7xf32> -> vector<8x64xf32>
    %190 = vector.extract_strided_slice %133 {offsets = [6, 0], sizes = [1, 64], strides = [1, 1]} : vector<9x64xf32> to vector<1x64xf32>
    %191 = vector.broadcast %190 : vector<1x64xf32> to vector<8x64xf32>
    %192 = arith.mulf %189, %191 : vector<8x64xf32>
    %c6_68 = arith.constant 6 : index
    %c0_69 = arith.constant 0 : index
    %c0_70 = arith.constant 0 : index
    %193 = vector.load %arg7[%c6_68, %c0_69, %c0_70] : memref<9x16x8xf32, #tpu.memory_space<vmem>>, vector<1x16x8xf32>
    %194 = vector.shape_cast %193 : vector<1x16x8xf32> to vector<16x8xf32>
    %cst_71 = arith.constant dense<0.000000e+00> : vector<16x64xf32>
    %195 = tpu.matmul %194, %192, %cst_71 {dimension_numbers = #tpu.dot_dimension_numbers<[1], [0], [0], [1], [0, 0, 1, 1], [], []>} : vector<16x8xf32>, vector<8x64xf32>, vector<16x64xf32> -> vector<16x64xf32>
    %196 = arith.addf %186, %195 : vector<16x64xf32>
    %197 = vector.extract_strided_slice %132 {offsets = [0, 8], sizes = [8, 56], strides = [1, 1]} : vector<8x64xf32> to vector<8x56xf32>
    %198 = vector.extract_strided_slice %132 {offsets = [0, 0], sizes = [8, 8], strides = [1, 1]} : vector<8x64xf32> to vector<8x8xf32>
    %199 = tpu.concatenate %197, %198 in 1 : vector<8x56xf32>, vector<8x8xf32> -> vector<8x64xf32>
    %200 = vector.extract_strided_slice %133 {offsets = [7, 0], sizes = [1, 64], strides = [1, 1]} : vector<9x64xf32> to vector<1x64xf32>
    %201 = vector.broadcast %200 : vector<1x64xf32> to vector<8x64xf32>
    %202 = arith.mulf %199, %201 : vector<8x64xf32>
    %c7_72 = arith.constant 7 : index
    %c0_73 = arith.constant 0 : index
    %c0_74 = arith.constant 0 : index
    %203 = vector.load %arg7[%c7_72, %c0_73, %c0_74] : memref<9x16x8xf32, #tpu.memory_space<vmem>>, vector<1x16x8xf32>
    %204 = vector.shape_cast %203 : vector<1x16x8xf32> to vector<16x8xf32>
    %cst_75 = arith.constant dense<0.000000e+00> : vector<16x64xf32>
    %205 = tpu.matmul %204, %202, %cst_75 {dimension_numbers = #tpu.dot_dimension_numbers<[1], [0], [0], [1], [0, 0, 1, 1], [], []>} : vector<16x8xf32>, vector<8x64xf32>, vector<16x64xf32> -> vector<16x64xf32>
    %206 = arith.addf %196, %205 : vector<16x64xf32>
    %207 = vector.extract_strided_slice %132 {offsets = [0, 9], sizes = [8, 55], strides = [1, 1]} : vector<8x64xf32> to vector<8x55xf32>
    %208 = vector.extract_strided_slice %132 {offsets = [0, 0], sizes = [8, 9], strides = [1, 1]} : vector<8x64xf32> to vector<8x9xf32>
    %209 = tpu.concatenate %207, %208 in 1 : vector<8x55xf32>, vector<8x9xf32> -> vector<8x64xf32>
    %210 = vector.extract_strided_slice %133 {offsets = [8, 0], sizes = [1, 64], strides = [1, 1]} : vector<9x64xf32> to vector<1x64xf32>
    %211 = vector.broadcast %210 : vector<1x64xf32> to vector<8x64xf32>
    %212 = arith.mulf %209, %211 : vector<8x64xf32>
    %c8_76 = arith.constant 8 : index
    %c0_77 = arith.constant 0 : index
    %c0_78 = arith.constant 0 : index
    %213 = vector.load %arg7[%c8_76, %c0_77, %c0_78] : memref<9x16x8xf32, #tpu.memory_space<vmem>>, vector<1x16x8xf32>
    %214 = vector.shape_cast %213 : vector<1x16x8xf32> to vector<16x8xf32>
    %cst_79 = arith.constant dense<0.000000e+00> : vector<16x64xf32>
    %215 = tpu.matmul %214, %212, %cst_79 {dimension_numbers = #tpu.dot_dimension_numbers<[1], [0], [0], [1], [0, 0, 1, 1], [], []>} : vector<16x8xf32>, vector<8x64xf32>, vector<16x64xf32> -> vector<16x64xf32>
    %216 = arith.addf %206, %215 : vector<16x64xf32>
    %c0_80 = arith.constant 0 : index
    %c0_81 = arith.constant 0 : index
    %217 = vector.load %arg8[%c0_80, %c0_81] : memref<16x1xf32, #tpu.memory_space<vmem>>, vector<16x1xf32>
    %218 = vector.broadcast %217 : vector<16x1xf32> to vector<16x64xf32>
    %219 = arith.addf %216, %218 : vector<16x64xf32>
    %cst_82 = arith.constant 0.000000e+00 : f32
    %220 = vector.broadcast %cst_82 : f32 to vector<16x64xf32>
    %221 = arith.maximumf %219, %220 : vector<16x64xf32>
    %c0_83 = arith.constant 0 : index
    %c0_84 = arith.constant 0 : index
    %222 = vector.load %arg14[%c0_83, %c0_84] : memref<64x256xf32, #tpu.memory_space<vmem>>, vector<64x256xf32>
    %cst_85 = arith.constant dense<0.000000e+00> : vector<16x256xf32>
    %223 = tpu.matmul %221, %222, %cst_85 {dimension_numbers = #tpu.dot_dimension_numbers<[1], [0], [0], [1], [0, 0, 1, 1], [], []>} : vector<16x64xf32>, vector<64x256xf32>, vector<16x256xf32> -> vector<16x256xf32>
    %c0_86 = arith.constant 0 : index
    %c0_87 = arith.constant 0 : index
    %224 = vector.load %arg12[%c0_86, %c0_87] : memref<9x256xf32, #tpu.memory_space<vmem>>, vector<9x256xf32>
    %225 = vector.extract_strided_slice %223 {offsets = [0, 239], sizes = [16, 17], strides = [1, 1]} : vector<16x256xf32> to vector<16x17xf32>
    %226 = vector.extract_strided_slice %223 {offsets = [0, 0], sizes = [16, 239], strides = [1, 1]} : vector<16x256xf32> to vector<16x239xf32>
    %227 = tpu.concatenate %225, %226 in 1 : vector<16x17xf32>, vector<16x239xf32> -> vector<16x256xf32>
    %228 = vector.extract_strided_slice %224 {offsets = [0, 0], sizes = [1, 256], strides = [1, 1]} : vector<9x256xf32> to vector<1x256xf32>
    %229 = vector.broadcast %228 : vector<1x256xf32> to vector<16x256xf32>
    %230 = arith.mulf %227, %229 : vector<16x256xf32>
    %c0_88 = arith.constant 0 : index
    %c0_89 = arith.constant 0 : index
    %c0_90 = arith.constant 0 : index
    %231 = vector.load %arg10[%c0_88, %c0_89, %c0_90] : memref<9x3x16xf32, #tpu.memory_space<vmem>>, vector<1x3x16xf32>
    %232 = vector.shape_cast %231 : vector<1x3x16xf32> to vector<3x16xf32>
    %cst_91 = arith.constant dense<0.000000e+00> : vector<3x256xf32>
    %233 = tpu.matmul %232, %230, %cst_91 {dimension_numbers = #tpu.dot_dimension_numbers<[1], [0], [0], [1], [0, 0, 1, 1], [], []>} : vector<3x16xf32>, vector<16x256xf32>, vector<3x256xf32> -> vector<3x256xf32>
    %234 = vector.extract_strided_slice %223 {offsets = [0, 240], sizes = [16, 16], strides = [1, 1]} : vector<16x256xf32> to vector<16x16xf32>
    %235 = vector.extract_strided_slice %223 {offsets = [0, 0], sizes = [16, 240], strides = [1, 1]} : vector<16x256xf32> to vector<16x240xf32>
    %236 = tpu.concatenate %234, %235 in 1 : vector<16x16xf32>, vector<16x240xf32> -> vector<16x256xf32>
    %237 = vector.extract_strided_slice %224 {offsets = [1, 0], sizes = [1, 256], strides = [1, 1]} : vector<9x256xf32> to vector<1x256xf32>
    %238 = vector.broadcast %237 : vector<1x256xf32> to vector<16x256xf32>
    %239 = arith.mulf %236, %238 : vector<16x256xf32>
    %c1_92 = arith.constant 1 : index
    %c0_93 = arith.constant 0 : index
    %c0_94 = arith.constant 0 : index
    %240 = vector.load %arg10[%c1_92, %c0_93, %c0_94] : memref<9x3x16xf32, #tpu.memory_space<vmem>>, vector<1x3x16xf32>
    %241 = vector.shape_cast %240 : vector<1x3x16xf32> to vector<3x16xf32>
    %cst_95 = arith.constant dense<0.000000e+00> : vector<3x256xf32>
    %242 = tpu.matmul %241, %239, %cst_95 {dimension_numbers = #tpu.dot_dimension_numbers<[1], [0], [0], [1], [0, 0, 1, 1], [], []>} : vector<3x16xf32>, vector<16x256xf32>, vector<3x256xf32> -> vector<3x256xf32>
    %243 = arith.addf %233, %242 : vector<3x256xf32>
    %244 = vector.extract_strided_slice %223 {offsets = [0, 241], sizes = [16, 15], strides = [1, 1]} : vector<16x256xf32> to vector<16x15xf32>
    %245 = vector.extract_strided_slice %223 {offsets = [0, 0], sizes = [16, 241], strides = [1, 1]} : vector<16x256xf32> to vector<16x241xf32>
    %246 = tpu.concatenate %244, %245 in 1 : vector<16x15xf32>, vector<16x241xf32> -> vector<16x256xf32>
    %247 = vector.extract_strided_slice %224 {offsets = [2, 0], sizes = [1, 256], strides = [1, 1]} : vector<9x256xf32> to vector<1x256xf32>
    %248 = vector.broadcast %247 : vector<1x256xf32> to vector<16x256xf32>
    %249 = arith.mulf %246, %248 : vector<16x256xf32>
    %c2_96 = arith.constant 2 : index
    %c0_97 = arith.constant 0 : index
    %c0_98 = arith.constant 0 : index
    %250 = vector.load %arg10[%c2_96, %c0_97, %c0_98] : memref<9x3x16xf32, #tpu.memory_space<vmem>>, vector<1x3x16xf32>
    %251 = vector.shape_cast %250 : vector<1x3x16xf32> to vector<3x16xf32>
    %cst_99 = arith.constant dense<0.000000e+00> : vector<3x256xf32>
    %252 = tpu.matmul %251, %249, %cst_99 {dimension_numbers = #tpu.dot_dimension_numbers<[1], [0], [0], [1], [0, 0, 1, 1], [], []>} : vector<3x16xf32>, vector<16x256xf32>, vector<3x256xf32> -> vector<3x256xf32>
    %253 = arith.addf %243, %252 : vector<3x256xf32>
    %254 = vector.extract_strided_slice %223 {offsets = [0, 255], sizes = [16, 1], strides = [1, 1]} : vector<16x256xf32> to vector<16x1xf32>
    %255 = vector.extract_strided_slice %223 {offsets = [0, 0], sizes = [16, 255], strides = [1, 1]} : vector<16x256xf32> to vector<16x255xf32>
    %256 = tpu.concatenate %254, %255 in 1 : vector<16x1xf32>, vector<16x255xf32> -> vector<16x256xf32>
    %257 = vector.extract_strided_slice %224 {offsets = [3, 0], sizes = [1, 256], strides = [1, 1]} : vector<9x256xf32> to vector<1x256xf32>
    %258 = vector.broadcast %257 : vector<1x256xf32> to vector<16x256xf32>
    %259 = arith.mulf %256, %258 : vector<16x256xf32>
    %c3_100 = arith.constant 3 : index
    %c0_101 = arith.constant 0 : index
    %c0_102 = arith.constant 0 : index
    %260 = vector.load %arg10[%c3_100, %c0_101, %c0_102] : memref<9x3x16xf32, #tpu.memory_space<vmem>>, vector<1x3x16xf32>
    %261 = vector.shape_cast %260 : vector<1x3x16xf32> to vector<3x16xf32>
    %cst_103 = arith.constant dense<0.000000e+00> : vector<3x256xf32>
    %262 = tpu.matmul %261, %259, %cst_103 {dimension_numbers = #tpu.dot_dimension_numbers<[1], [0], [0], [1], [0, 0, 1, 1], [], []>} : vector<3x16xf32>, vector<16x256xf32>, vector<3x256xf32> -> vector<3x256xf32>
    %263 = arith.addf %253, %262 : vector<3x256xf32>
    %c4_104 = arith.constant 4 : index
    %c0_105 = arith.constant 0 : index
    %c0_106 = arith.constant 0 : index
    %264 = vector.load %arg10[%c4_104, %c0_105, %c0_106] : memref<9x3x16xf32, #tpu.memory_space<vmem>>, vector<1x3x16xf32>
    %265 = vector.shape_cast %264 : vector<1x3x16xf32> to vector<3x16xf32>
    %cst_107 = arith.constant dense<0.000000e+00> : vector<3x256xf32>
    %266 = tpu.matmul %265, %223, %cst_107 {dimension_numbers = #tpu.dot_dimension_numbers<[1], [0], [0], [1], [0, 0, 1, 1], [], []>} : vector<3x16xf32>, vector<16x256xf32>, vector<3x256xf32> -> vector<3x256xf32>
    %267 = arith.addf %263, %266 : vector<3x256xf32>
    %268 = vector.extract_strided_slice %223 {offsets = [0, 1], sizes = [16, 255], strides = [1, 1]} : vector<16x256xf32> to vector<16x255xf32>
    %269 = vector.extract_strided_slice %223 {offsets = [0, 0], sizes = [16, 1], strides = [1, 1]} : vector<16x256xf32> to vector<16x1xf32>
    %270 = tpu.concatenate %268, %269 in 1 : vector<16x255xf32>, vector<16x1xf32> -> vector<16x256xf32>
    %271 = vector.extract_strided_slice %224 {offsets = [5, 0], sizes = [1, 256], strides = [1, 1]} : vector<9x256xf32> to vector<1x256xf32>
    %272 = vector.broadcast %271 : vector<1x256xf32> to vector<16x256xf32>
    %273 = arith.mulf %270, %272 : vector<16x256xf32>
    %c5_108 = arith.constant 5 : index
    %c0_109 = arith.constant 0 : index
    %c0_110 = arith.constant 0 : index
    %274 = vector.load %arg10[%c5_108, %c0_109, %c0_110] : memref<9x3x16xf32, #tpu.memory_space<vmem>>, vector<1x3x16xf32>
    %275 = vector.shape_cast %274 : vector<1x3x16xf32> to vector<3x16xf32>
    %cst_111 = arith.constant dense<0.000000e+00> : vector<3x256xf32>
    %276 = tpu.matmul %275, %273, %cst_111 {dimension_numbers = #tpu.dot_dimension_numbers<[1], [0], [0], [1], [0, 0, 1, 1], [], []>} : vector<3x16xf32>, vector<16x256xf32>, vector<3x256xf32> -> vector<3x256xf32>
    %277 = arith.addf %267, %276 : vector<3x256xf32>
    %278 = vector.extract_strided_slice %223 {offsets = [0, 15], sizes = [16, 241], strides = [1, 1]} : vector<16x256xf32> to vector<16x241xf32>
    %279 = vector.extract_strided_slice %223 {offsets = [0, 0], sizes = [16, 15], strides = [1, 1]} : vector<16x256xf32> to vector<16x15xf32>
    %280 = tpu.concatenate %278, %279 in 1 : vector<16x241xf32>, vector<16x15xf32> -> vector<16x256xf32>
    %281 = vector.extract_strided_slice %224 {offsets = [6, 0], sizes = [1, 256], strides = [1, 1]} : vector<9x256xf32> to vector<1x256xf32>
    %282 = vector.broadcast %281 : vector<1x256xf32> to vector<16x256xf32>
    %283 = arith.mulf %280, %282 : vector<16x256xf32>
    %c6_112 = arith.constant 6 : index
    %c0_113 = arith.constant 0 : index
    %c0_114 = arith.constant 0 : index
    %284 = vector.load %arg10[%c6_112, %c0_113, %c0_114] : memref<9x3x16xf32, #tpu.memory_space<vmem>>, vector<1x3x16xf32>
    %285 = vector.shape_cast %284 : vector<1x3x16xf32> to vector<3x16xf32>
    %cst_115 = arith.constant dense<0.000000e+00> : vector<3x256xf32>
    %286 = tpu.matmul %285, %283, %cst_115 {dimension_numbers = #tpu.dot_dimension_numbers<[1], [0], [0], [1], [0, 0, 1, 1], [], []>} : vector<3x16xf32>, vector<16x256xf32>, vector<3x256xf32> -> vector<3x256xf32>
    %287 = arith.addf %277, %286 : vector<3x256xf32>
    %288 = vector.extract_strided_slice %223 {offsets = [0, 16], sizes = [16, 240], strides = [1, 1]} : vector<16x256xf32> to vector<16x240xf32>
    %289 = vector.extract_strided_slice %223 {offsets = [0, 0], sizes = [16, 16], strides = [1, 1]} : vector<16x256xf32> to vector<16x16xf32>
    %290 = tpu.concatenate %288, %289 in 1 : vector<16x240xf32>, vector<16x16xf32> -> vector<16x256xf32>
    %291 = vector.extract_strided_slice %224 {offsets = [7, 0], sizes = [1, 256], strides = [1, 1]} : vector<9x256xf32> to vector<1x256xf32>
    %292 = vector.broadcast %291 : vector<1x256xf32> to vector<16x256xf32>
    %293 = arith.mulf %290, %292 : vector<16x256xf32>
    %c7_116 = arith.constant 7 : index
    %c0_117 = arith.constant 0 : index
    %c0_118 = arith.constant 0 : index
    %294 = vector.load %arg10[%c7_116, %c0_117, %c0_118] : memref<9x3x16xf32, #tpu.memory_space<vmem>>, vector<1x3x16xf32>
    %295 = vector.shape_cast %294 : vector<1x3x16xf32> to vector<3x16xf32>
    %cst_119 = arith.constant dense<0.000000e+00> : vector<3x256xf32>
    %296 = tpu.matmul %295, %293, %cst_119 {dimension_numbers = #tpu.dot_dimension_numbers<[1], [0], [0], [1], [0, 0, 1, 1], [], []>} : vector<3x16xf32>, vector<16x256xf32>, vector<3x256xf32> -> vector<3x256xf32>
    %297 = arith.addf %287, %296 : vector<3x256xf32>
    %298 = vector.extract_strided_slice %223 {offsets = [0, 17], sizes = [16, 239], strides = [1, 1]} : vector<16x256xf32> to vector<16x239xf32>
    %299 = vector.extract_strided_slice %223 {offsets = [0, 0], sizes = [16, 17], strides = [1, 1]} : vector<16x256xf32> to vector<16x17xf32>
    %300 = tpu.concatenate %298, %299 in 1 : vector<16x239xf32>, vector<16x17xf32> -> vector<16x256xf32>
    %301 = vector.extract_strided_slice %224 {offsets = [8, 0], sizes = [1, 256], strides = [1, 1]} : vector<9x256xf32> to vector<1x256xf32>
    %302 = vector.broadcast %301 : vector<1x256xf32> to vector<16x256xf32>
    %303 = arith.mulf %300, %302 : vector<16x256xf32>
    %c8_120 = arith.constant 8 : index
    %c0_121 = arith.constant 0 : index
    %c0_122 = arith.constant 0 : index
    %304 = vector.load %arg10[%c8_120, %c0_121, %c0_122] : memref<9x3x16xf32, #tpu.memory_space<vmem>>, vector<1x3x16xf32>
    %305 = vector.shape_cast %304 : vector<1x3x16xf32> to vector<3x16xf32>
    %cst_123 = arith.constant dense<0.000000e+00> : vector<3x256xf32>
    %306 = tpu.matmul %305, %303, %cst_123 {dimension_numbers = #tpu.dot_dimension_numbers<[1], [0], [0], [1], [0, 0, 1, 1], [], []>} : vector<3x16xf32>, vector<16x256xf32>, vector<3x256xf32> -> vector<3x256xf32>
    %307 = arith.addf %297, %306 : vector<3x256xf32>
    %c0_124 = arith.constant 0 : index
    %c0_125 = arith.constant 0 : index
    %308 = vector.load %arg11[%c0_124, %c0_125] : memref<3x1xf32, #tpu.memory_space<vmem>>, vector<3x1xf32>
    %309 = vector.broadcast %308 : vector<3x1xf32> to vector<3x256xf32>
    %310 = arith.addf %307, %309 : vector<3x256xf32>
    %311 = math.tanh %310 : vector<3x256xf32>
    %c0_126 = arith.constant 0 : index
    %c0_127 = arith.constant 0 : index
    %c0_128 = arith.constant 0 : index
    %312 = vector.load %arg15[%c0_126, %c0_127, %c0_128] : memref<1x3x256xf32, #tpu.memory_space<vmem>>, vector<1x3x256xf32>
    %313 = vector.shape_cast %312 : vector<1x3x256xf32> to vector<3x256xf32>
    %314 = vector.shape_cast %311 : vector<3x256xf32> to vector<1x3x256xf32>
    tpu.vector_store %arg15[%c0_126, %c0_127, %c0_128], %314 {strides = array<i32>} : memref<1x3x256xf32, #tpu.memory_space<vmem>>, vector<1x3x256xf32>,
    return
  }
  func.func @transform_0(%arg0: i32) -> (i32, i32, i32) {
    %c0_i32 = arith.constant 0 : i32
    %c0_i32_0 = arith.constant 0 : i32
    %c0_i32_1 = arith.constant 0 : i32
    return %arg0, %c0_i32, %c0_i32_0 : i32, i32, i32
  }
  func.func @transform_1(%arg0: i32) -> (i32, i32) {
    %c0_i32 = arith.constant 0 : i32
    %c0_i32_0 = arith.constant 0 : i32
    %c0_i32_1 = arith.constant 0 : i32
    return %c0_i32, %c0_i32_0 : i32, i32
  }
  func.func @transform_2(%arg0: i32) -> (i32, i32) {
    %c0_i32 = arith.constant 0 : i32
    %c0_i32_0 = arith.constant 0 : i32
    %c0_i32_1 = arith.constant 0 : i32
    return %c0_i32, %c0_i32_0 : i32, i32
  }
  func.func @transform_3(%arg0: i32) -> (i32, i32, i32) {
    %c0_i32 = arith.constant 0 : i32
    %c0_i32_0 = arith.constant 0 : i32
    %c0_i32_1 = arith.constant 0 : i32
    %c0_i32_2 = arith.constant 0 : i32
    return %c0_i32, %c0_i32_0, %c0_i32_1 : i32, i32, i32
  }
  func.func @transform_4(%arg0: i32) -> (i32, i32) {
    %c0_i32 = arith.constant 0 : i32
    %c0_i32_0 = arith.constant 0 : i32
    %c0_i32_1 = arith.constant 0 : i32
    return %c0_i32, %c0_i32_0 : i32, i32
  }
  func.func @transform_5(%arg0: i32) -> (i32, i32) {
    %c0_i32 = arith.constant 0 : i32
    %c0_i32_0 = arith.constant 0 : i32
    %c0_i32_1 = arith.constant 0 : i32
    return %c0_i32, %c0_i32_0 : i32, i32
  }
  func.func @transform_6(%arg0: i32) -> (i32, i32, i32) {
    %c0_i32 = arith.constant 0 : i32
    %c0_i32_0 = arith.constant 0 : i32
    %c0_i32_1 = arith.constant 0 : i32
    %c0_i32_2 = arith.constant 0 : i32
    return %c0_i32, %c0_i32_0, %c0_i32_1 : i32, i32, i32
  }
  func.func @transform_7(%arg0: i32) -> (i32, i32) {
    %c0_i32 = arith.constant 0 : i32
    %c0_i32_0 = arith.constant 0 : i32
    %c0_i32_1 = arith.constant 0 : i32
    return %c0_i32, %c0_i32_0 : i32, i32
  }
  func.func @transform_8(%arg0: i32) -> (i32, i32) {
    %c0_i32 = arith.constant 0 : i32
    %c0_i32_0 = arith.constant 0 : i32
    %c0_i32_1 = arith.constant 0 : i32
    return %c0_i32, %c0_i32_0 : i32, i32
  }
  func.func @transform_9(%arg0: i32) -> (i32, i32, i32) {
    %c0_i32 = arith.constant 0 : i32
    %c0_i32_0 = arith.constant 0 : i32
    %c0_i32_1 = arith.constant 0 : i32
    %c0_i32_2 = arith.constant 0 : i32
    return %c0_i32, %c0_i32_0, %c0_i32_1 : i32, i32, i32
  }
  func.func @transform_10(%arg0: i32) -> (i32, i32) {
    %c0_i32 = arith.constant 0 : i32
    %c0_i32_0 = arith.constant 0 : i32
    %c0_i32_1 = arith.constant 0 : i32
    return %c0_i32, %c0_i32_0 : i32, i32
  }
  func.func @transform_11(%arg0: i32) -> (i32, i32) {
    %c0_i32 = arith.constant 0 : i32
    %c0_i32_0 = arith.constant 0 : i32
    %c0_i32_1 = arith.constant 0 : i32
    return %c0_i32, %c0_i32_0 : i32, i32
  }
  func.func @transform_12(%arg0: i32) -> (i32, i32) {
    %c0_i32 = arith.constant 0 : i32
    %c0_i32_0 = arith.constant 0 : i32
    %c0_i32_1 = arith.constant 0 : i32
    return %c0_i32, %c0_i32_0 : i32, i32
  }
  func.func @transform_13(%arg0: i32) -> (i32, i32) {
    %c0_i32 = arith.constant 0 : i32
    %c0_i32_0 = arith.constant 0 : i32
    %c0_i32_1 = arith.constant 0 : i32
    return %c0_i32, %c0_i32_0 : i32, i32
  }
  func.func @transform_14(%arg0: i32) -> (i32, i32, i32) {
    %c0_i32 = arith.constant 0 : i32
    %c0_i32_0 = arith.constant 0 : i32
    %c0_i32_1 = arith.constant 0 : i32
    return %arg0, %c0_i32, %c0_i32_0 : i32, i32, i32
  }
}

</mosaic_0001>

<bundles_post_ra>
// kernel: generator_forward.1
= control target key start
LH: loop header
LB: loop body
LE: loop exit
PB: predicated region body
PF: predicated region fallthrough
CT: control target
= control target key end

     0   :  { %s3997_s29 = smov 0   ;;  %s4557_s0 = inlined_call_operand.vmem [shape: f32[2,1,8], index: 0, kind: input, shape index: {}]   ;;  %s4558_s1 = inlined_call_operand.vmem [shape: f32[8,64], index: 1, kind: input, shape index: {}]   ;;  %s4559_s2 = inlined_call_operand.vmem [shape: f32[1,64], index: 2, kind: input, shape index: {}]   ;;  %s4560_s3 = inlined_call_operand.vmem [shape: f32[9,8,4], index: 3, kind: input, shape index: {}]   ;;  %s4561_s4 = inlined_call_operand.vmem [shape: f32[8,1], index: 4, kind: input, shape index: {}]   ;;  %s4562_s5 = inlined_call_operand.vmem [shape: f32[9,16], index: 5, kind: input, shape index: {}]   ;;  %s4563_s6 = inlined_call_operand.vmem [shape: f32[9,16,8], index: 6, kind: input, shape index: {}]   ;;  %s4564_s7 = inlined_call_operand.vmem [shape: f32[16,1], index: 7, kind: input, shape index: {}]   ;;  %s4565_s8 = inlined_call_operand.vmem [shape: f32[9,64], index: 8, kind: input, shape index: {}]   ;;  %s4566_s9 = inlined_call_operand.vmem [shape: f32[9,3,16], index: 9, kind: input, shape index: {}]   ;;  %s4567_s10 = inlined_call_operand.vmem [shape: f32[3,1], index: 10, kind: input, shape index: {}]   ;;  %s4568_s11 = inlined_call_operand.vmem [shape: f32[9,256], index: 11, kind: input, shape index: {}]   ;;  %s4569_s12 = inlined_call_operand.vmem [shape: f32[16,64], index: 12, kind: input, shape index: {}]   ;;  %s4570_s13 = inlined_call_operand.vmem [shape: f32[64,256], index: 13, kind: input, shape index: {}]   ;;  %s4571_s14 = inlined_call_operand.vmem [shape: f32[2,3,256], index: 14, kind: output, shape index: {}]  }
   0x1 LB: > { %s3482_s30 = sadd.s32 4294967295, %s3880_s29   ;;  %p3486_p0 = scmp.ge.s32.totalorder %s3880_s29, 1  ;;  %s3880_s29 = sphi %s3997_s29, %s24_s29  }
   0x2   : > { %p410_p1 = scmp.lt.s32.totalorder %s3880_s29, 3 }
   0x4   : > { %p411_p2 = pnand %p3486_p0, %p410_p1 }
   0x5   : > { %v463_v0 = vld [vmem:[%s4558_s1] sm:$0xff] (!%p411_p2)  ;;  %p454_p3 = scmp.lt.s32.totalorder (!%p411_p2), %s3482_s30, 1  ;;  %v3882_v1 = vmov (!%p411_p2), 0.0   ;;  %vm3883_vm0 = vmmov (!%p411_p2), 0   ;;  %vm465_vm1 = vcmask (!%p411_p2), 64512   ;;  %v539_v3 = vlaneseq (!%p411_p2)  ;;  %s3884_s22 = smov (!%p411_p2), 80  }
   0x6   : > { %414 = sbr.rel (%p411_p2) target bundleno = 1972 (0x7b4), region = 76  ;;  %3631 = vmatprep.subr.mxu1 (!%p411_p2), %v3882_v1  ;;  %3633 = vmatprep.mubr.msk.f32.mxu1 (!%p411_p2), %vm3883_vm0, %v3882_v1  ;;  %v464_v5 = vld [vmem:[%s4559_s2] sm:$0x1] (!%p411_p2)  ;;  %s4572_s23 = smov (!%p411_p2), 112   ;;  %v3899_v25 = vmov (!%p411_p2), 0   ;;  %vm599_vm6 = vcmask (!%p411_p2), 31744  }
   0x7   : > { %3632 = vmatpush3.msra.mxu1 (!%p411_p2), %v463_v0  ;;  %3661 = vmatprep.subr.mxu0 (!%p411_p2), %v3882_v1  ;;  %v4024_v4 = vshrl.u32 (!%p411_p2), %v539_v3, 7  ;;  %s3886_s24 = smov (!%p411_p2), 96   ;;  %s3887_s25 = smov (!%p411_p2), 4   ;;  %v1391_v26 = vld [vmem:[%s4561_s4] sm:$0xff] (!%p411_p2)  ;;  %vm611_vm7 = vcmask (!%p411_p2), 1043456   ;;  %vm585_vm8 = vcmask (!%p411_p2), 39936  }
   0x8   : > { %3636 = vmatprep.subr.mxu1 (!%p411_p2), %v3882_v1  ;;  %3663 = vmatprep.mubr.msk.f32.mxu0 (!%p411_p2), %vm3883_vm0, %v3882_v1  ;;  %s3888_s26 = smov (!%p411_p2), 116   ;;  %s3889_s27 = smov (!%p411_p2), 5   ;;  %v4073_v28 = vld [vmem:[%s4562_s5] sm:$0xff] (!%p411_p2)  ;;  %v3494_v35 = vld [vmem:[%s4560_s3 + $0x8] sm:$0xff] (!%p411_p2)  ;;  %vm767_vm9 = vcmask (!%p411_p2), 23552   ;;  %vm859_vm10 = vcmask (!%p411_p2), 7168  }
   0x9   : > { %v4030_v6 = vsub.s32 (!%p411_p2), 0, %v4024_v4  ;;  %vm567_vm2 = vcmp.eq.s32.totalorder (!%p411_p2), %v4024_v4, 3  ;;  %vm549_vm3 = vcmp.eq.s32.totalorder (!%p411_p2), %v4024_v4, 1  ;;  %vm558_vm4 = vcmp.eq.s32.totalorder (!%p411_p2), %v4024_v4, 2  ;;  %s3890_s28 = smov (!%p411_p2), 117   ;;  %s3891_s15 = smov (!%p411_p2), 3   ;;  %3868 = vset.pattern.permute.xlu1 (!%p411_p2), %v3899_v25  ;;  %3869 = vset.pattern.permute.xlu0 (!%p411_p2), %v3899_v25 }
   0xa   : > { %v3493_v10 = vsel (!%p411_p2), %vm567_vm2, 1.0, %v3882_v1  ;;  %v3491_v11 = vsel (!%p411_p2), %vm549_vm3, 1.0, %v3882_v1  ;;  %v3492_v15 = vsel (!%p411_p2), %vm558_vm4, 1.0, %v3882_v1  ;;  %vm541_vm5 = vcmp.eq.s32.totalorder (!%p411_p2), %v4024_v4, 0  ;;  %s3892_s16 = smov (!%p411_p2), 115   ;;  %s3893_s17 = smov (!%p411_p2), 1  }
   0xb   : > { %v3490_v17 = vsel (!%p411_p2), %vm541_vm5, 1.0, %v3882_v1  ;;  %s4574_s18 = smov (!%p411_p2), 113   ;;  %s3896_s20 = smov (!%p411_p2), 127   ;;  %v4068_v27 = vsub.s32 (!%p411_p2), 1, %v4024_v4  ;;  %v590_v34 = vrot.slane (!%p411_p2), %v4073_v28, %v4030_v6  ;;  %v4084_v36 = vsub.s32 (!%p411_p2), 2, %v4024_v4  ;;  %v592_v42 = vld [vmem:[%s4560_s3] sm:$0xff] (!%p411_p2) }
   0xc   : > { %s3897_s21 = smov (!%p411_p2), 13   ;;  %v4097_v43 = vsub.s32 (!%p411_p2), 3, %v4024_v4  ;;  %v3499_v49 = vld [vmem:[%s4560_s3 + $0x10] sm:$0xff] (!%p411_p2)  ;;  %v4110_v50 = vsub.s32 (!%p411_p2), 5, %v4024_v4  ;;  %vm1029_vm11 = vcmask (!%p411_p2), 121856   ;;  %v3502_v56 = vld [vmem:[%s4560_s3 + $0x18] sm:$0xff] (!%p411_p2) }
   0xd   : > { %s4579_s30 = smov (!%p454_p3, %s3482_s30), 1  ;;  %v604_v29 = vrot.slane %v4073_v28, %v4068_v27  ;;  %v772_v41 = vrot.slane %v4073_v28, %v4084_v36  ;;  %v4124_v57 = vsub.s32 6, %v4024_v4  ;;  %vm1121_vm12 = vcmask 105472   ;;  %v3505_v63 = vld [vmem:[%s4560_s3 + $0x20] sm:$0xff]  ;;  %v3508_v0 = vld [vmem:[%s4560_s3 + $0x28] sm:$0xff] }
   0xe   : > { %s456_s19 = scalar_lea.vmem %s4557_s0, %s4579_s30  ;;  %v864_v48 = vrot.slane %v4073_v28, %v4097_v43  ;;  %v1034_v55 = vrot.slane %v4073_v28, %v4110_v50  ;;  %vm1213_vm13 = vcmask 97280   ;;  %vm1305_vm14 = vcmask 89088  }
   0xf   : > { %v462_v2 = vld [vmem:[%s456_s19] sm:$0x1]  ;;  %s3895_s19 = smov 15   ;;  %v1126_v62 = vrot.slane %v4073_v28, %v4124_v57  ;;  %vm1401_vm15 = vcmask 130048   ;;  %vm1676_vm2 = vcmask 56320   ;;  %vm1959_vm3 = vcmask 515072  }
  0x10   : > { %3634 = vmatmul.mubr.msk.f32.vlgmr.msra.gmra.mrb[0].mxu1 %vm465_vm1, %v462_v2  ;;  %v4143_v2 = vsub.s32 7, %v4024_v4  ;;  %vm2058_vm4 = vcmask 465920   ;;  %vm2157_vm5 = vcmask 457728  }
  0x11   : > { %3638 = vmatprep.mubr.msk.f32.mxu1 %vm3883_vm0, %v3882_v1 }
  0x12   : > { %v1218_v4 = vrot.slane %v4073_v28, %v4143_v2 }
  0xe3   : > { %v535_v7 = vpop.f32.mrb[0].mxu1 }
  0xe4   : > { %v536_v8 = vadd.f32 %v535_v7, %v464_v5  ;;  %v3635_v9 = vpop.f32.mrb[1].mxu1 }
  0xe5   : > { %v3511_v9 = vld [vmem:[%s4560_s3 + $0x30] sm:$0xff] }
  0xe6   : > { %v547_v12 = vrot.slane %v536_v8, %v4030_v6 }
  0xe8   : > { %v570_v13 = vmul.f32 %v3493_v10, %v547_v12  ;;  %v552_v14 = vmul.f32 %v3491_v11, %v547_v12  ;;  %v561_v16 = vmul.f32 %v3492_v15, %v547_v12  ;;  %v548_v19 = vmul.f32 %v3490_v17, %v547_v12  ;;  %v3517_v15 = vld [vmem:[%s4562_s5 + $0x8] ss:$0 sm:$0xff] }
  0xea   : > { %572 = vrot.lane.b32.xlu1 %v570_v13, %s3884_s22  ;;  %554 = vrot.lane.b32.xlu0 %v552_v14, %s4572_s23  ;;  %s3898_s22 = smov 125   ;;  %v3514_v14 = vld [vmem:[%s4560_s3 + $0x38] sm:$0xff] }
  0xee   : > { %563 = vrot.lane.b32.xlu0 %v561_v16, %s3886_s24  ;;  %s3900_s24 = smov 12  }
 0x15c   : > { %v555_v18 = vpop.permute.xlu0 %554  ;;  %v573_v23 = vpop.permute.xlu1 %572 }
 0x15d   : > { %v557_v20 = vadd.f32 %v555_v18, %v548_v19 }
 0x160   : > { %v564_v21 = vpop.permute.xlu0 %563 }
 0x161   : > { %v566_v22 = vadd.f32 %v564_v21, %v557_v20  ;;  %v3518_v20 = vld [vmem:[%s4560_s3 + $0x40] sm:$0xff] }
 0x162   : > { %v1399_v21 = vld [vmem:[%s4569_s12] sm:$0xff] }
 0x163   : > { %v4042_v24 = vadd.f32 %v573_v23, %v566_v22  ;;  %v1400_v22 = vld [vmem:[%s4569_s12 + $0x8] sm:$0xff] }
 0x164   : > { %v3734_v23 = vpack.c.bf16 %v1400_v22, %v1399_v21  ;;  %v4256_v21 = vld [vmem:[%s4565_s8] sm:$0xff] }
 0x165   : > { %596 = vrot.lane.b32.xlu0 %v4042_v24, %s3887_s25  ;;  %593 = vrot.lane.b32.xlu1 %v4042_v24, %s3888_s26  ;;  %s3901_s25 = smov 124   ;;  %s3902_s26 = smov 11   ;;  %v1503_v22 = vrot.slane %v4256_v21, %v4068_v27 }
 0x169   : > { %582 = vrot.lane.b32.xlu0 %v4042_v24, %s3889_s27  ;;  %579 = vrot.lane.b32.xlu1 %v4042_v24, %s3890_s28  ;;  %s3903_s27 = smov 123   ;;  %s3911_s28 = smov 65  }
 0x16d   : > { %764 = vrot.lane.b32.xlu0 %v4042_v24, %s3891_s15  ;;  %761 = vrot.lane.b32.xlu1 %v4042_v24, %s3892_s16  ;;  %s3912_s15 = smov 63   ;;  %s3913_s16 = smov 57  }
 0x171   : > { %856 = vrot.lane.b32.xlu0 %v4042_v24, %s3893_s17  ;;  %853 = vrot.lane.b32.xlu1 %v4042_v24, %s4574_s18 }
 0x175   : > { %1026 = vrot.lane.b32.xlu0 %v4042_v24, %s3895_s19  ;;  %1023 = vrot.lane.b32.xlu1 %v4042_v24, %s3896_s20 }
 0x179   : > { %1118 = vrot.lane.b32.xlu0 %v4042_v24, %s3897_s21  ;;  %1115 = vrot.lane.b32.xlu1 %v4042_v24, %s3898_s22  ;;  %s3905_s21 = smov 8   ;;  %s3906_s22 = smov 72  }
 0x17d   : > { %1210 = vrot.lane.b32.xlu0 %v4042_v24, %s3900_s24  ;;  %1207 = vrot.lane.b32.xlu1 %v4042_v24, %s3901_s25  ;;  %s3907_s24 = smov 9   ;;  %s3908_s25 = smov 73  }
 0x181   : > { %1302 = vrot.lane.b32.xlu0 %v4042_v24, %s3902_s26  ;;  %1299 = vrot.lane.b32.xlu1 %v4042_v24, %s3903_s27  ;;  %s3909_s26 = smov 7   ;;  %s3910_s27 = smov 71  }
 0x185   : > { %1394 = vperm.xlu1 %3868, %v1391_v26  }
 0x1d7   : > { %v597_v30 = vpop.permute.xlu0 %596  ;;  %v594_v31 = vpop.permute.xlu1 %593 }
 0x1d8   : > { %v600_v32 = vsel %vm599_vm6, %v594_v31, %v597_v30 }
 0x1d9   : > { %v605_v33 = vmul.f32 %v604_v29, %v600_v32 }
 0x1db   : > { %v583_v37 = vpop.permute.xlu0 %582  ;;  %3637 = vmatpush3.msk.msra.mxu1 %vm611_vm7, %v605_v33  ;;  %v580_v38 = vpop.permute.xlu1 %579 }
 0x1dc   : > { %v586_v39 = vsel %vm585_vm8, %v580_v38, %v583_v37  ;;  %3639 = vmatmul.mubr.msk.f32.vlgmr.msra.gmra.mrb[2].mxu1 %vm599_vm6, %v3494_v35  ;;  %3641 = vmatprep.subr.mxu1 %v3882_v1  ;;  %vm2987_vm8 = vcmask 1039360  }
 0x1dd   : > { %v591_v40 = vmul.f32 %v590_v34, %v586_v39  ;;  %3643 = vmatprep.mubr.msk.f32.mxu1 %vm3883_vm0, %v3882_v1 }
 0x1df   : > { %v765_v44 = vpop.permute.xlu0 %764  ;;  %3642 = vmatpush3.msk.msra.mxu1 %vm611_vm7, %v591_v40  ;;  %v762_v45 = vpop.permute.xlu1 %761 }
 0x1e0   : > { %v768_v46 = vsel %vm767_vm9, %v762_v45, %v765_v44  ;;  %3644 = vmatmul.mubr.msk.f32.vlgmr.msra.gmra.mrb[4].mxu1 %vm599_vm6, %v592_v42  ;;  %3646 = vmatprep.subr.mxu1 %v3882_v1  ;;  %vm3096_vm9 = vcmask 924672  }
 0x1e1   : > { %v773_v47 = vmul.f32 %v772_v41, %v768_v46  ;;  %3648 = vmatprep.mubr.msk.f32.mxu1 %vm3883_vm0, %v3882_v1 }
 0x1e3   : > { %v857_v51 = vpop.permute.xlu0 %856  ;;  %3647 = vmatpush3.msk.msra.mxu1 %vm611_vm7, %v773_v47  ;;  %v854_v52 = vpop.permute.xlu1 %853 }
 0x1e4   : > { %v860_v53 = vsel %vm859_vm10, %v854_v52, %v857_v51  ;;  %3649 = vmatmul.mubr.msk.f32.vlgmr.msra.gmra.mrb[6].mxu1 %vm599_vm6, %v3499_v49  ;;  %3651 = vmatprep.subr.mxu1 %v3882_v1 }
 0x1e5   : > { %v865_v54 = vmul.f32 %v864_v48, %v860_v53  ;;  %3653 = vmatprep.mubr.msk.f32.mxu1 %vm3883_vm0, %v3882_v1 }
 0x1e7   : > { %v1027_v58 = vpop.permute.xlu0 %1026  ;;  %3652 = vmatpush3.msk.msra.mxu1 %vm611_vm7, %v865_v54  ;;  %v1024_v59 = vpop.permute.xlu1 %1023 }
 0x1e8   : > { %v1030_v60 = vsel %vm1029_vm11, %v1024_v59, %v1027_v58  ;;  %3654 = vmatmul.mubr.msk.f32.vlgmr.msra.gmra.mrb[8].mxu1 %vm599_vm6, %v3502_v56  ;;  %3656 = vmatprep.subr.mxu1 %v3882_v1  ;;  %v3522_v59 = vld [vmem:[%s4563_s6 + $0x10] sm:$0xff] }
 0x1e9   : > { %v1035_v61 = vmul.f32 %v1034_v55, %v1030_v60  ;;  %3657 = vmatpush3.msk.msra.mxu1 %vm611_vm7, %v4042_v24  ;;  %3658 = vmatprep.mubr.msk.f32.mxu1 %vm3883_vm0, %v3882_v1  ;;  %v3904_v24 = vmov 0.0|0.0  }
 0x1ea   : > { %3666 = vmatprep.subr.mxu1 %v3882_v1 }
 0x1eb   : > { %v1119_v3 = vpop.permute.xlu0 %1118  ;;  %3662 = vmatpush3.msk.msra.mxu0 %vm611_vm7, %v1035_v61  ;;  %v1116_v5 = vpop.permute.xlu1 %1115 }
 0x1ec   : > { %v1122_v7 = vsel %vm1121_vm12, %v1116_v5, %v1119_v3  ;;  %3659 = vmatmul.mubr.msk.f32.vlgmr.msra.gmra.mrb[10].mxu1 %vm599_vm6, %v3505_v63  ;;  %3664 = vmatmul.mubr.msk.f32.vlgmr.msra.gmra.mrb[0].mxu0 %vm599_vm6, %v3508_v0  ;;  %v2349_v63 = vld [vmem:[%s4564_s7] sm:$0xff]  ;;  %v2366_v0 = vld [vmem:[%s4570_s13 + $0x8] sm:$0xff]  ;;  %v2368_v3 = vld [vmem:[%s4570_s13 + $0x18] sm:$0xff] }
 0x1ed   : > { %v1127_v8 = vmul.f32 %v1126_v62, %v1122_v7  ;;  %3668 = vmatprep.mubr.msk.f32.mxu1 %vm3883_vm0, %v3882_v1  ;;  %3671 = vmatprep.subr.mxu0 %v3882_v1  ;;  %v2350_v62 = vld [vmem:[%s4564_s7 + $0x8] sm:$0xff]  ;;  %v3736_v5 = vpack.c.bf16 %v2368_v3, %v2366_v0  ;;  %v2365_v7 = vld [vmem:[%s4570_s13] sm:$0xff] }
 0x1ee   : > { %3673 = vmatprep.mubr.msk.f32.mxu0 %vm3883_vm0, %v3882_v1  ;;  %v3537_v3 = vld [vmem:[%s4563_s6 + $0x48] sm:$0xff] }
 0x1ef   : > { %v1211_v10 = vpop.permute.xlu0 %1210  ;;  %3667 = vmatpush3.msk.msra.mxu1 %vm611_vm7, %v1127_v8  ;;  %v1208_v11 = vpop.permute.xlu1 %1207  ;;  %v2367_v8 = vld [vmem:[%s4570_s13 + $0x10] sm:$0xff] }
 0x1f0   : > { %v1214_v12 = vsel %vm1213_vm13, %v1208_v11, %v1211_v10  ;;  %3669 = vmatmul.mubr.msk.f32.vlgmr.msra.gmra.mrb[12].mxu1 %vm599_vm6, %v3511_v9  ;;  %3676 = vmatprep.subr.mxu1 %v3882_v1  ;;  %v3738_v9 = vpack.c.bf16 %v2367_v8, %v2365_v7  ;;  %v2372_v10 = vld [vmem:[%s4570_s13 + $0x38] sm:$0xff]  ;;  %v2369_v11 = vld [vmem:[%s4570_s13 + $0x20] sm:$0xff] }
 0x1f1   : > { %v1219_v13 = vmul.f32 %v1218_v4, %v1214_v12  ;;  %3678 = vmatprep.mubr.msk.f32.mxu1 %vm3883_vm0, %v3882_v1  ;;  %v2370_v4 = vld [vmem:[%s4570_s13 + $0x28] sm:$0xff]  ;;  %v2371_v12 = vld [vmem:[%s4570_s13 + $0x30] sm:$0xff] }
 0x1f3   : > { %v1303_v16 = vpop.permute.xlu0 %1302  ;;  %3672 = vmatpush3.msk.msra.mxu0 %vm611_vm7, %v1219_v13  ;;  %v1300_v17 = vpop.permute.xlu1 %1299  ;;  %v3740_v13 = vpack.c.bf16 %v2372_v10, %v2370_v4  ;;  %v2162_v4 = vrot.slane %v4256_v21, %v4143_v2  ;;  %v3541_v10 = vld [vmem:[%s4563_s6 + $0x58] sm:$0xff] }
 0x1f4   : > { %v1306_v18 = vsel %vm1305_vm14, %v1300_v17, %v1303_v16  ;;  %3674 = vmatmul.mubr.msk.f32.vlgmr.msra.gmra.mrb[2].mxu0 %vm599_vm6, %v3514_v14  ;;  %3733 = vmatprep.subr.bf16.mxu0 %v3904_v24  ;;  %v2374_v14 = vld [vmem:[%s4570_s13 + $0x48] sm:$0xff]  ;;  %v3742_v16 = vpack.c.bf16 %v2371_v12, %v2369_v11  ;;  %v3544_v11 = vld [vmem:[%s4563_s6 + $0x60] sm:$0xff] }
 0x1f5   : > { %v1311_v19 = vmul.f32 %v3517_v15, %v1306_v18  ;;  %3685 = vmatprep.mubr.msk.f32.mxu0 %vm3883_vm0, %v3882_v1  ;;  %3735 = vmatpush3.bf16.msra.mxu0 %v3734_v23  ;;  %v2376_v15 = vld [vmem:[%s4570_s13 + $0x58] sm:$0xff]  ;;  %v2373_v18 = vld [vmem:[%s4570_s13 + $0x40] sm:$0xff]  ;;  %vm1484_vm0 = vcmask 72704  }
 0x1f6   : > { %3737 = vmatprep.subr.bf16.mxu0 %v3736_v5  ;;  %v3744_v17 = vpack.c.bf16 %v2376_v15, %v2374_v14  ;;  %v3540_v5 = vld [vmem:[%s4563_s6 + $0x50] sm:$0xff]  ;;  %v3552_v15 = vld [vmem:[%s4565_s8 + $0x8] ss:$0 sm:$0xff] }
 0x1f7   : > { %3677 = vmatpush3.msk.msra.mxu1 %vm611_vm7, %v1311_v19  ;;  %v2375_v19 = vld [vmem:[%s4570_s13 + $0x50] sm:$0xff]  ;;  %vm2483_vm7 = vcmask 138240  }
 0x1f8   : > { %3679 = vmatmul.mubr.msk.f32.vlgmr.msra.gmra.mrb[14].mxu1 %vm599_vm6, %v3518_v20  ;;  %v3746_v20 = vpack.c.bf16 %v2375_v19, %v2373_v18  ;;  %vm2256_vm6 = vcmask 449536   ;;  %v3548_v18 = vld [vmem:[%s4563_s6 + $0x70] sm:$0xff] }
 0x1f9   : > { %3690 = vmatprep.mubr.msk.f32.mxu1 %vm465_vm1, %v3522_v59 }
 0x204   : > { %v1395_v53 = vpop.permute.xlu1 %1394 }
 0x2af   : > { %v681_v25 = vpop.f32.mrb[2].mxu1 }
 0x2b0   : > { %v3640_v26 = vpop.f32.mrb[3].mxu1 }
 0x2b3   : > { %v757_v28 = vpop.f32.mrb[4].mxu1 }
 0x2b4   : > { %v758_v29 = vadd.f32 %v757_v28, %v681_v25  ;;  %v3645_v30 = vpop.f32.mrb[5].mxu1  ;;  %v1489_v28 = vrot.slane %v4256_v21, %v4030_v6 }
 0x2b7   : > { %v848_v31 = vpop.f32.mrb[6].mxu1 }
 0x2b8   : > { %v852_v32 = vadd.f32 %v848_v31, %v758_v29  ;;  %v3650_v33 = vpop.f32.mrb[7].mxu1  ;;  %v3523_v29 = vld [vmem:[%s4563_s6 + $0x18] sm:$0xff] }
 0x2bb   : > { %v940_v34 = vpop.f32.mrb[8].mxu1 }
 0x2bc   : > { %v944_v35 = vadd.f32 %v940_v34, %v852_v32  ;;  %v3655_v37 = vpop.f32.mrb[9].mxu1  ;;  %v1491_v32 = vld [vmem:[%s4563_s6] sm:$0xff] }
 0x2bf   : > { %v1018_v38 = vpop.f32.mrb[10].mxu1  ;;  %v1110_v39 = vpop.f32.mrb[0].mxu0 }
 0x2c0   : > { %v1022_v40 = vadd.f32 %v1018_v38, %v944_v35  ;;  %v3660_v41 = vpop.f32.mrb[11].mxu1  ;;  %v3665_v42 = vpop.f32.mrb[1].mxu0  ;;  %v1681_v35 = vrot.slane %v4256_v21, %v4084_v36 }
 0x2c1   : > { %v1779_v41 = vrot.slane %v4256_v21, %v4097_v43  ;;  %v1492_v42 = vld [vmem:[%s4563_s6 + $0x8] sm:$0xff] }
 0x2c2   : > { %v1114_v44 = vadd.f32 %v1110_v39, %v1022_v40 }
 0x2c3   : > { %v1202_v45 = vpop.f32.mrb[12].mxu1 }
 0x2c4   : > { %v1206_v46 = vadd.f32 %v1202_v45, %v1114_v44  ;;  %v3670_v47 = vpop.f32.mrb[13].mxu1 }
 0x2c7   : > { %v1294_v48 = vpop.f32.mrb[2].mxu0 }
 0x2c8   : > { %v1298_v49 = vadd.f32 %v1294_v48, %v1206_v46  ;;  %v3675_v51 = vpop.f32.mrb[3].mxu0  ;;  %v3528_v46 = vld [vmem:[%s4563_s6 + $0x20] sm:$0xff] }
 0x2c9   : > { %v3532_v51 = vld [vmem:[%s4563_s6 + $0x30] sm:$0xff] }
 0x2cb   : > { %v1386_v52 = vpop.f32.mrb[14].mxu1 }
 0x2cc   : > { %v1390_v54 = vadd.f32 %v1386_v52, %v1298_v49  ;;  %v3680_v55 = vpop.f32.mrb[15].mxu1  ;;  %v3529_v49 = vld [vmem:[%s4563_s6 + $0x28] sm:$0xff] }
 0x2ce   : > { %v1397_v56 = vadd.f32 %v1395_v53, %v1390_v54  ;;  %v1964_v54 = vrot.slane %v4256_v21, %v4110_v50 }
 0x2d0   : > { %v1398_v58 = vmax.f32 %v1397_v56, 0.0  ;;  %v3533_v56 = vld [vmem:[%s4563_s6 + $0x38] sm:$0xff] }
 0x2d2   : > { %3686 = vmatmul.mubr.msk.f32.vlgmr.msra.gmra.mrb[4].mxu0 %vm1401_vm15, %v1398_v58  ;;  %v3536_v58 = vld [vmem:[%s4563_s6 + $0x40] sm:$0xff] }
 0x2d3   : > { %2452 = vmatprep.mubr.f32.mxu0 %v3882_v1  ;;  %3739 = vmatpush1.bf16.msra.mxu0 %v3738_v9 }
 0x2d4   : > { %3741 = vmatprep.subr.bf16.mxu0 %v3740_v13 }
 0x2d7   : > { %3743 = vmatpush1.bf16.msra.mxu0 %v3742_v16 }
 0x2d8   : > { %3745 = vmatprep.subr.bf16.mxu0 %v3744_v17  ;;  %v3545_v17 = vld [vmem:[%s4563_s6 + $0x68] sm:$0xff] }
 0x2db   : > { %3747 = vmatpush1.bf16.msra.mxu0 %v3746_v20  ;;  %v3549_v20 = vld [vmem:[%s4563_s6 + $0x78] sm:$0xff] }
 0x3a5   : > { %v4191_v60 = vpop.f32.mrb[4].mxu0 }
 0x3a6   : > { %1496 = vrot.lane.b32.xlu1 %v4191_v60, %s3905_s21  ;;  %1493 = vrot.lane.b32.xlu0 %v4191_v60, %s3906_s22  ;;  %v3687_v61 = vpop.f32.mrb[5].mxu0  ;;  %s3914_s21 = smov 121   ;;  %s3915_s22 = smov 56  }
 0x3aa   : > { %1481 = vrot.lane.b32.xlu1 %v4191_v60, %s3907_s24  ;;  %1478 = vrot.lane.b32.xlu0 %v4191_v60, %s3908_s25  ;;  %s3916_s24 = smov 120   ;;  %s3917_s25 = smov 55  }
 0x3ae   : > { %1673 = vrot.lane.b32.xlu1 %v4191_v60, %s3909_s26  ;;  %1670 = vrot.lane.b32.xlu0 %v4191_v60, %s3910_s27  ;;  %s3918_s26 = smov 119   ;;  %s4576_s27 = smov 113  }
 0x3b2   : > { %1772 = vrot.lane.b32.xlu1 %v4191_v60, %s3893_s17  ;;  %1769 = vrot.lane.b32.xlu0 %v4191_v60, %s3911_s28 }
 0x3b6   : > { %1956 = vrot.lane.b32.xlu1 %v4191_v60, %s3912_s15  ;;  %1953 = vrot.lane.b32.xlu0 %v4191_v60, %s3896_s20 }
 0x3ba   : > { %2055 = vrot.lane.b32.xlu1 %v4191_v60, %s3913_s16  ;;  %2052 = vrot.lane.b32.xlu0 %v4191_v60, %s3914_s21 }
 0x3be   : > { %2154 = vrot.lane.b32.xlu1 %v4191_v60, %s3915_s22  ;;  %2151 = vrot.lane.b32.xlu0 %v4191_v60, %s3916_s24 }
 0x3c2   : > { %2253 = vrot.lane.b32.xlu1 %v4191_v60, %s3917_s25  ;;  %2250 = vrot.lane.b32.xlu0 %v4191_v60, %s3918_s26  ;;  %s3919_s25 = smov 16   ;;  %s3920_s26 = smov 17  }
 0x3c6   : > { %2358 = vperm.xlu1 %3868, %v2350_v62   ;;  %2353 = vperm.xlu0 %3869, %v2349_v63   ;;  %v2063_v63 = vrot.slane %v4256_v21, %v4124_v57  ;;  %v3553_v21 = vld [vmem:[%s4563_s6 + $0x80] sm:$0xff] }
 0x418   : > { %v1497_v23 = vpop.permute.xlu1 %1496  ;;  %v1494_v24 = vpop.permute.xlu0 %1493 }
 0x419   : > { %v1499_v25 = vsel %vm465_vm1, %v1494_v24, %v1497_v23  ;;  %v2378_v23 = vld [vmem:[%s4570_s13 + $0x68] sm:$0xff]  ;;  %v2380_v24 = vld [vmem:[%s4570_s13 + $0x78] sm:$0xff] }
 0x41a   : > { %v1504_v26 = vmul.f32 %v1503_v22, %v1499_v25  ;;  %v3554_v22 = vld [vmem:[%s4563_s6 + $0x88] sm:$0xff]  ;;  %v3748_v25 = vpack.c.bf16 %v2380_v24, %v2378_v23 }
 0x41c   : > { %v1482_v30 = vpop.permute.xlu1 %1481  ;;  %3688 = vmatprep.subr.mxu1 %v1504_v26  ;;  %v1479_v31 = vpop.permute.xlu0 %1478  ;;  %3749 = vmatprep.subr.bf16.mxu0 %v3748_v25 }
 0x41d   : > { %v1485_v33 = vsel %vm1484_vm0, %v1479_v31, %v1482_v30  ;;  %3689 = vmatpush3.msra.mxu1 %v1504_v26  ;;  %v2377_v26 = vld [vmem:[%s4570_s13 + $0x60] sm:$0xff] }
 0x41e   : > { %v1490_v34 = vmul.f32 %v1489_v28, %v1485_v33  ;;  %3691 = vmatmul.mubr.msk.f32.vlgmr.msra.gmra.mrb[16].mxu1 %vm465_vm1, %v3523_v29  ;;  %v2379_v28 = vld [vmem:[%s4570_s13 + $0x70] sm:$0xff] }
 0x41f   : > { %3695 = vmatprep.mubr.msk.f32.mxu1 %vm465_vm1, %v1491_v32  ;;  %v3750_v29 = vpack.c.bf16 %v2379_v28, %v2377_v26 }
 0x420   : > { %v1674_v37 = vpop.permute.xlu1 %1673  ;;  %3693 = vmatprep.subr.mxu1 %v1490_v34  ;;  %v1671_v38 = vpop.permute.xlu0 %1670 }
 0x421   : > { %v1677_v39 = vsel %vm1676_vm2, %v1671_v38, %v1674_v37  ;;  %3694 = vmatpush3.msra.mxu1 %v1490_v34  ;;  %3751 = vmatpush1.bf16.msra.mxu0 %v3750_v29  ;;  %v2504_v29 = vld [vmem:[%s4566_s9] sm:$0x7] }
 0x422   : > { %v1682_v40 = vmul.f32 %v1681_v35, %v1677_v39 }
 0x424   : > { %v1773_v44 = vpop.permute.xlu1 %1772  ;;  %3698 = vmatprep.subr.mxu1 %v1682_v40  ;;  %v1770_v45 = vpop.permute.xlu0 %1769 }
 0x425   : > { %v1775_v47 = vsel %vm859_vm10, %v1770_v45, %v1773_v44 }
 0x426   : > { %v1780_v48 = vmul.f32 %v1779_v41, %v1775_v47  ;;  %3696 = vmatmul.mubr.msk.f32.vlgmr.msra.gmra.mrb[16].mxu1 %vm465_vm1, %v1492_v42 }
 0x427   : > { %3699 = vmatpush3.msra.mxu1 %v1682_v40  ;;  %3700 = vmatprep.mubr.msk.f32.mxu1 %vm465_vm1, %v3528_v46  ;;  %v3415_v46 = vld [vmem:[%s4567_s10] sm:$0x7] }
 0x428   : > { %3703 = vmatprep.subr.mxu1 %v1780_v48  ;;  %v1957_v52 = vpop.permute.xlu1 %1956  ;;  %v1954_v53 = vpop.permute.xlu0 %1953 }
 0x429   : > { %v1960_v55 = vsel %vm1959_vm3, %v1954_v53, %v1957_v52 }
 0x42a   : > { %v1965_v59 = vmul.f32 %v1964_v54, %v1960_v55 }
 0x42c   : > { %v2056_v61 = vpop.permute.xlu1 %2055  ;;  %v2053_v62 = vpop.permute.xlu0 %2052 }
 0x42d   : > { %v2059_v0 = vsel %vm2058_vm4, %v2053_v62, %v2056_v61 }
 0x42e   : > { %3701 = vmatmul.mubr.msk.f32.vlgmr.msra.gmra.mrb[16].mxu1 %vm465_vm1, %v3529_v49  ;;  %v2064_v7 = vmul.f32 %v2063_v63, %v2059_v0  ;;  %v4436_v49 = vld [vmem:[%s4568_s11 + $0x8] sm:$0xff] }
 0x42f   : > { %3704 = vmatpush3.msra.mxu1 %v1780_v48  ;;  %3705 = vmatprep.mubr.msk.f32.mxu1 %vm465_vm1, %v3532_v51  ;;  %v4431_v48 = vld [vmem:[%s4568_s11] sm:$0xff]  ;;  %v2530_v54 = vrot.slane %v4436_v49, %v4068_v27  ;;  %v2710_v25 = vrot.slane %v4436_v49, %v4084_v36 }
 0x430   : > { %3708 = vmatprep.subr.mxu1 %v4191_v60  ;;  %v2152_v8 = vpop.permute.xlu0 %2151  ;;  %v2526_v53 = vrot.slane %v4431_v48, %v4068_v27  ;;  %v2495_v27 = vrot.slane %v4431_v48, %v4030_v6  ;;  %v2706_v24 = vrot.slane %v4431_v48, %v4084_v36 }
 0x434   : > { %v2251_v14 = vpop.permute.xlu0 %2250 }
 0x436   : > { %3706 = vmatmul.mubr.msk.f32.vlgmr.msra.gmra.mrb[16].mxu1 %vm465_vm1, %v3533_v56 }
 0x437   : > { %3709 = vmatpush3.msra.mxu1 %v4191_v60  ;;  %3710 = vmatprep.mubr.msk.f32.mxu1 %vm465_vm1, %v3536_v58  ;;  %v2155_v60 = vpop.permute.xlu1 %2154 }
 0x438   : > { %3713 = vmatprep.subr.mxu1 %v1965_v59  ;;  %v2158_v9 = vsel %vm2157_vm5, %v2152_v8, %v2155_v60 }
 0x439   : > { %v2163_v12 = vmul.f32 %v2162_v4, %v2158_v9  ;;  %v2499_v9 = vrot.slane %v4436_v49, %v4030_v6 }
 0x43b   : > { %v2254_v13 = vpop.permute.xlu1 %2253 }
 0x43c   : > { %v2257_v16 = vsel %vm2256_vm6, %v2251_v14, %v2254_v13 }
 0x43d   : > { %v2262_v19 = vmul.f32 %v3552_v15, %v2257_v16 }
 0x43e   : > { %3711 = vmatmul.mubr.msk.f32.vlgmr.msra.gmra.mrb[16].mxu1 %vm465_vm1, %v3537_v3 }
 0x43f   : > { %3714 = vmatpush3.msra.mxu1 %v1965_v59  ;;  %3715 = vmatprep.mubr.msk.f32.mxu1 %vm465_vm1, %v3540_v5 }
 0x440   : > { %3718 = vmatprep.subr.mxu1 %v2064_v7 }
 0x445   : > { %v2354_v30 = vpop.permute.xlu0 %2353  ;;  %v2359_v34 = vpop.permute.xlu1 %2358 }
 0x446   : > { %3716 = vmatmul.mubr.msk.f32.vlgmr.msra.gmra.mrb[16].mxu1 %vm465_vm1, %v3541_v10 }
 0x447   : > { %3719 = vmatpush3.msra.mxu1 %v2064_v7  ;;  %3720 = vmatprep.mubr.msk.f32.mxu1 %vm465_vm1, %v3544_v11 }
 0x448   : > { %3723 = vmatprep.subr.mxu1 %v2163_v12 }
 0x44e   : > { %3721 = vmatmul.mubr.msk.f32.vlgmr.msra.gmra.mrb[16].mxu1 %vm465_vm1, %v3545_v17 }
 0x44f   : > { %3724 = vmatpush3.msra.mxu1 %v2163_v12  ;;  %3725 = vmatprep.mubr.msk.f32.mxu1 %vm465_vm1, %v3548_v18  ;;  %v3559_v12 = vld [vmem:[%s4566_s9 + $0x4] sm:$0x7] }
 0x450   : > { %3728 = vmatprep.subr.mxu1 %v2262_v19 }
 0x456   : > { %3726 = vmatmul.mubr.msk.f32.vlgmr.msra.gmra.mrb[16].mxu1 %vm465_vm1, %v3549_v20 }
 0x457   : > { %3729 = vmatpush3.msra.mxu1 %v2262_v19  ;;  %3730 = vmatprep.mubr.msk.f32.mxu1 %vm465_vm1, %v3553_v21 }
 0x45e   : > { %3731 = vmatmul.mubr.msk.f32.vlgmr.msra.gmra.mrb[16].mxu1 %vm465_vm1, %v3554_v22  ;;  %vm2381_vm1 = vcmask 523264  }
 0x531   : > { %v3732_v31 = vpop.f32.mrb[16].mxu1 }
 0x532   : > { %v2338_v32 = vpop.f32.mrb[17].mxu1  ;;  %v2362_v35 = vadd.f32 %v3732_v31, %v2359_v34 }
 0x533   : > { %v2361_v33 = vadd.f32 %v2354_v30, %v2338_v32 }
 0x534   : > { %v2364_v38 = vmax.f32 %v2362_v35, 0.0 }
 0x535   : > { %v2363_v37 = vmax.f32 %v2361_v33, 0.0 }
 0x537   : > { %3557 = vmatmul.mubr.msk.f32.vlgmr.msra.gmra.mrb[6].mxu0 %vm2381_vm1, %v2363_v37 }
 0x538   : > { %2458 = vmatprep.mubr.f32.mxu0 %v3882_v1 }
 0x53b   : > { %3558 = vmatmul.mubr.msk.f32.gmra.mrb[8].mxu0 %vm2381_vm1, %v2364_v38 }
 0x53c   : > { %2604 = vmatprep.mubr.f32.mxu0 %v3882_v1 }
 0x60a   : > { %v4361_v39 = vpop.f32.mrb[6].mxu0 }
 0x60b   : > { %2511 = vrot.lane.b32.xlu1 %v4361_v39, %s3919_s25  ;;  %v4364_v40 = vpop.f32.mrb[7].mxu0 }
 0x60e   : > { %v4366_v41 = vpop.f32.mrb[8].mxu0 }
 0x60f   : > { %2505 = vrot.lane.b32.xlu1 %v4364_v40, %s3919_s25  ;;  %2513 = vrot.lane.b32.xlu0 %v4366_v41, %s3919_s25  ;;  %v4370_v42 = vpop.f32.mrb[9].mxu0  ;;  %v3770_v44 = vpack.c.bf16 %v4366_v41, %v4361_v39 }
 0x610   : > { %v3768_v45 = vpack.c.bf16 %v4370_v42, %v4364_v40 }
 0x613   : > { %2479 = vrot.lane.b32.xlu1 %v4361_v39, %s3920_s26  ;;  %2507 = vrot.lane.b32.xlu0 %v4370_v42, %s3919_s25 }
 0x617   : > { %2471 = vrot.lane.b32.xlu1 %v4364_v40, %s3920_s26  ;;  %2481 = vrot.lane.b32.xlu0 %v4366_v41, %s3920_s26 }
 0x61b   : > { %2685 = vrot.lane.b32.xlu1 %v4364_v40, %s3895_s19  ;;  %2473 = vrot.lane.b32.xlu0 %v4370_v42, %s3920_s26 }
 0x61f   : > { %2691 = vrot.lane.b32.xlu1 %v4361_v39, %s3895_s19  ;;  %2693 = vrot.lane.b32.xlu0 %v4366_v41, %s3895_s19 }
 0x623   : > { %2793 = vrot.lane.b32.xlu1 %v4364_v40, %s3893_s17  ;;  %2687 = vrot.lane.b32.xlu0 %v4370_v42, %s3895_s19  ;;  %s4577_s19 = smov 112  }
 0x627   : > { %2799 = vrot.lane.b32.xlu1 %v4361_v39, %s3893_s17  ;;  %2795 = vrot.lane.b32.xlu0 %v4370_v42, %s3893_s17 }
 0x62b   : > { %2979 = vrot.lane.b32.xlu1 %v4361_v39, %s3896_s20  ;;  %2801 = vrot.lane.b32.xlu0 %v4366_v41, %s3893_s17  ;;  %s3921_s17 = smov 111  }
 0x62f   : > { %2983 = vrot.lane.b32.xlu1 %v4366_v41, %s3896_s20  ;;  %2981 = vrot.lane.b32.xlu0 %v4364_v40, %s3896_s20 }
 0x633   : > { %3088 = vrot.lane.b32.xlu1 %v4361_v39, %s4576_s27  ;;  %2985 = vrot.lane.b32.xlu0 %v4370_v42, %s3896_s20  ;;  %s3580_s20 = sshll.u32 %s4579_s30, 3 }
 0x634   : > { %s461_s16 = scalar_lea.vmem %s4571_s14, %s3580_s20 }
 0x637   : > { %3092 = vrot.lane.b32.xlu1 %v4366_v41, %s4576_s27  ;;  %3090 = vrot.lane.b32.xlu0 %v4364_v40, %s4576_s27 }
 0x63b   : > { %3197 = vrot.lane.b32.xlu1 %v4361_v39, %s4577_s19  ;;  %3094 = vrot.lane.b32.xlu0 %v4370_v42, %s4576_s27 }
 0x63f   : > { %3201 = vrot.lane.b32.xlu1 %v4366_v41, %s4577_s19  ;;  %3199 = vrot.lane.b32.xlu0 %v4364_v40, %s4577_s19 }
 0x643   : > { %3306 = vrot.lane.b32.xlu1 %v4361_v39, %s3921_s17  ;;  %3203 = vrot.lane.b32.xlu0 %v4370_v42, %s4577_s19  ;;  %v3566_v39 = vld [vmem:[%s4566_s9 + $0x10] sm:$0x7] }
 0x647   : > { %3310 = vrot.lane.b32.xlu1 %v4366_v41, %s3921_s17  ;;  %3308 = vrot.lane.b32.xlu0 %v4364_v40, %s3921_s17 }
 0x64b   : > { %3418 = vperm.xlu1 %3868, %v3415_v46   ;;  %3312 = vrot.lane.b32.xlu0 %v4370_v42, %s3921_s17 }
 0x67d   : > { %v2512_v47 = vpop.permute.xlu1 %2511 }
 0x681   : > { %v2506_v51 = vpop.permute.xlu1 %2505  ;;  %v2514_v52 = vpop.permute.xlu0 %2513 }
 0x682   : > { %v2515_v55 = vsel %vm1401_vm15, %v2512_v47, %v2506_v51  ;;  %v2521_v56 = vsel %vm1401_vm15, %v2506_v51, %v2512_v47 }
 0x683   : > { %v2531_v63 = vmul.f32 %v2526_v53, %v2521_v56  ;;  %v2532_v0 = vmul.f32 %v2530_v54, %v2515_v55  ;;  %v3562_v56 = vld [vmem:[%s4566_s9 + $0x8] sm:$0x7] }
 0x685   : > { %v2480_v58 = vpop.permute.xlu1 %2479  ;;  %v2508_v59 = vpop.permute.xlu0 %2507 }
 0x686   : > { %v2516_v61 = vsel %vm1401_vm15, %v2514_v52, %v2508_v59  ;;  %v2522_v62 = vsel %vm1401_vm15, %v2508_v59, %v2514_v52  ;;  %v2814_v52 = vrot.slane %v4431_v48, %v4097_v43 }
 0x687   : > { %v2533_v3 = vmul.f32 %v2526_v53, %v2522_v62  ;;  %v2534_v5 = vmul.f32 %v2530_v54, %v2516_v61  ;;  %v2818_v53 = vrot.slane %v4436_v49, %v4097_v43 }
 0x689   : > { %v3754_v7 = vpack.c.bf16 %v2533_v3, %v2531_v63  ;;  %v2472_v60 = vpop.permute.xlu1 %2471  ;;  %v2482_v8 = vpop.permute.xlu0 %2481  ;;  %v3752_v4 = vpack.c.bf16 %v2534_v5, %v2532_v0 }
 0x68a   : > { %v2484_v10 = vsel %vm2483_vm7, %v2480_v58, %v2472_v60  ;;  %v2490_v11 = vsel %vm2483_vm7, %v2472_v60, %v2480_v58 }
 0x68b   : > { %3753 = vmatprep.subr.bf16.mxu0 %v3752_v4  ;;  %v2500_v17 = vmul.f32 %v2495_v27, %v2490_v11  ;;  %v2501_v18 = vmul.f32 %v2499_v9, %v2484_v10  ;;  %v3005_v4 = vrot.slane %v4436_v49, %v4110_v50 }
 0x68c   : > { %3755 = vmatpush1.bf16.msra.mxu0 %v3754_v7 }
 0x68d   : > { %v2686_v13 = vpop.permute.xlu1 %2685  ;;  %v2474_v14 = vpop.permute.xlu0 %2473 }
 0x68e   : > { %v2485_v15 = vsel %vm2483_vm7, %v2482_v8, %v2474_v14  ;;  %v2491_v16 = vsel %vm2483_vm7, %v2474_v14, %v2482_v8 }
 0x68f   : > { %v2502_v19 = vmul.f32 %v2495_v27, %v2491_v16  ;;  %v2503_v20 = vmul.f32 %v2499_v9, %v2485_v15  ;;  %3560 = vmatmul.mubr.msk.f32.vlgmr.msra.gmra.mrb[10].mxu0 %vm1401_vm15, %v3559_v12  ;;  %v3564_v9 = vld [vmem:[%s4566_s9 + $0xc] sm:$0x7]  ;;  %v3001_v16 = vrot.slane %v4431_v48, %v4110_v50 }
 0x690   : > { %2678 = vmatprep.mubr.f32.mxu0 %v3882_v1 }
 0x691   : > { %v3758_v6 = vpack.c.bf16 %v2502_v19, %v2500_v17  ;;  %v2692_v21 = vpop.permute.xlu1 %2691  ;;  %v2694_v22 = vpop.permute.xlu0 %2693  ;;  %v3756_v23 = vpack.c.bf16 %v2503_v20, %v2501_v18  ;;  %v3114_v19 = vrot.slane %v4436_v49, %v4124_v57 }
 0x692   : > { %v2695_v26 = vsel %vm1029_vm11, %v2692_v21, %v2686_v13  ;;  %v2701_v28 = vsel %vm1029_vm11, %v2686_v13, %v2692_v21 }
 0x693   : > { %3757 = vmatprep.subr.bf16.mxu0 %v3756_v23  ;;  %v2711_v34 = vmul.f32 %v2706_v24, %v2701_v28  ;;  %v2712_v35 = vmul.f32 %v2710_v25, %v2695_v26 }
 0x694   : > { %3759 = vmatpush1.bf16.msra.mxu0 %v3758_v6 }
 0x695   : > { %v2794_v30 = vpop.permute.xlu1 %2793  ;;  %v2688_v31 = vpop.permute.xlu0 %2687 }
 0x696   : > { %v2696_v32 = vsel %vm1029_vm11, %v2694_v22, %v2688_v31  ;;  %v2702_v33 = vsel %vm1029_vm11, %v2688_v31, %v2694_v22  ;;  %vm3314_vm11 = vcmask 908288  }
 0x697   : > { %v2713_v37 = vmul.f32 %v2706_v24, %v2702_v33  ;;  %v2714_v36 = vmul.f32 %v2710_v25, %v2696_v32  ;;  %3561 = vmatmul.mubr.msk.f32.vlgmr.msra.gmra.mrb[10].mxu0 %vm1401_vm15, %v2504_v29  ;;  %v3110_v25 = vrot.slane %v4431_v48, %v4124_v57  ;;  %v3223_v32 = vrot.slane %v4436_v49, %v4143_v2  ;;  %v3568_v57 = vld [vmem:[%s4566_s9 + $0x14] sm:$0x7] }
 0x698   : > { %2784 = vmatprep.mubr.f32.mxu0 %v3882_v1  ;;  %v3219_v49 = vrot.slane %v4431_v48, %v4143_v2  ;;  %v3570_v2 = vld [vmem:[%s4566_s9 + $0x18] sm:$0x7] }
 0x699   : > { %v3762_v38 = vpack.c.bf16 %v2713_v37, %v2711_v34  ;;  %v2800_v46 = vpop.permute.xlu1 %2799  ;;  %v2796_v47 = vpop.permute.xlu0 %2795  ;;  %v3760_v51 = vpack.c.bf16 %v2714_v36, %v2712_v35 }
 0x69a   : > { %v2803_v54 = vsel %vm859_vm10, %v2800_v46, %v2794_v30  ;;  %v2809_v55 = vsel %vm859_vm10, %v2794_v30, %v2800_v46 }
 0x69b   : > { %3761 = vmatprep.subr.bf16.mxu0 %v3760_v51  ;;  %v2819_v63 = vmul.f32 %v2814_v52, %v2809_v55  ;;  %v2820_v0 = vmul.f32 %v2818_v53, %v2803_v54 }
 0x69c   : > { %3763 = vmatpush1.bf16.msra.mxu0 %v3762_v38 }
 0x69d   : > { %v2980_v58 = vpop.permute.xlu1 %2979  ;;  %v2802_v59 = vpop.permute.xlu0 %2801 }
 0x69e   : > { %v2804_v61 = vsel %vm859_vm10, %v2802_v59, %v2796_v47  ;;  %v2810_v62 = vsel %vm859_vm10, %v2796_v47, %v2802_v59  ;;  %vm3205_vm10 = vcmask 916480  }
 0x69f   : > { %v2821_v3 = vmul.f32 %v2814_v52, %v2810_v62  ;;  %v2822_v43 = vmul.f32 %v2818_v53, %v2804_v61  ;;  %3563 = vmatmul.mubr.msk.f32.vlgmr.msra.gmra.mrb[10].mxu0 %vm1401_vm15, %v3562_v56 }
 0x6a0   : > { %2892 = vmatprep.mubr.f32.mxu0 %v3882_v1 }
 0x6a1   : > { %v3766_v5 = vpack.c.bf16 %v2821_v3, %v2819_v63  ;;  %v2984_v7 = vpop.permute.xlu1 %2983  ;;  %v2982_v60 = vpop.permute.xlu0 %2981  ;;  %v3764_v8 = vpack.c.bf16 %v2822_v43, %v2820_v0 }
 0x6a2   : > { %v2996_v27 = vsel %vm2987_vm8, %v2982_v60, %v2980_v58  ;;  %v2988_v40 = vsel %vm2987_vm8, %v2980_v58, %v2982_v60  ;;  %v3575_v58 = vld [vmem:[%s4568_s11 + $0x18] ss:$0 sm:$0xff] }
 0x6a3   : > { %3765 = vmatprep.subr.bf16.mxu0 %v3764_v8  ;;  %v3007_v13 = vmul.f32 %v3005_v4, %v2996_v27  ;;  %v3006_v20 = vmul.f32 %v3001_v16, %v2988_v40  ;;  %v3572_v27 = vld [vmem:[%s4566_s9 + $0x1c] sm:$0x7] }
 0x6a4   : > { %3767 = vmatpush1.bf16.msra.mxu0 %v3766_v5  ;;  %v3574_v5 = vld [vmem:[%s4568_s11 + $0x10] ss:$0 sm:$0xff] }
 0x6a5   : > { %v3089_v10 = vpop.permute.xlu1 %3088  ;;  %v2986_v11 = vpop.permute.xlu0 %2985  ;;  %3769 = vmatprep.subr.bf16.mxu0 %v3768_v45 }
 0x6a6   : > { %v2997_v12 = vsel %vm2987_vm8, %v2986_v11, %v2984_v7  ;;  %v2989_v14 = vsel %vm2987_vm8, %v2984_v7, %v2986_v11 }
 0x6a7   : > { %v3009_v15 = vmul.f32 %v3005_v4, %v2997_v12  ;;  %3565 = vmatmul.mubr.msk.f32.vlgmr.msra.gmra.mrb[10].mxu0 %vm1401_vm15, %v3564_v9  ;;  %v3008_v18 = vmul.f32 %v3001_v16, %v2989_v14 }
 0x6a8   : > { %3771 = vmatpush1.bf16.msra.mxu0 %v3770_v44  ;;  %2970 = vmatprep.mubr.f32.mxu0 %v3882_v1 }
 0x6a9   : > { %v3093_v42 = vpop.permute.xlu1 %3092  ;;  %v3091_v45 = vpop.permute.xlu0 %3090  ;;  %v3772_v17 = vpack.c.bf16 %v3009_v15, %v3007_v13  ;;  %v3774_v6 = vpack.c.bf16 %v3008_v18, %v3006_v20 }
 0x6aa   : > { %v3105_v50 = vsel %vm3096_vm9, %v3091_v45, %v3089_v10  ;;  %v3097_v26 = vsel %vm3096_vm9, %v3089_v10, %v3091_v45  ;;  %v3576_v10 = vld [vmem:[%s4566_s9 + $0x20] sm:$0x7] }
 0x6ab   : > { %3773 = vmatprep.subr.bf16.mxu0 %v3772_v17  ;;  %v3116_v22 = vmul.f32 %v3114_v19, %v3105_v50  ;;  %v3115_v33 = vmul.f32 %v3110_v25, %v3097_v26 }
 0x6ad   : > { %v3198_v41 = vpop.permute.xlu1 %3197  ;;  %v3095_v44 = vpop.permute.xlu0 %3094 }
 0x6ae   : > { %v3106_v21 = vsel %vm3096_vm9, %v3095_v44, %v3093_v42  ;;  %v3098_v23 = vsel %vm3096_vm9, %v3093_v42, %v3095_v44 }
 0x6af   : > { %v3118_v24 = vmul.f32 %v3114_v19, %v3106_v21  ;;  %3567 = vmatmul.mubr.msk.f32.vlgmr.msra.gmra.mrb[10].mxu0 %vm1401_vm15, %v3566_v39  ;;  %v3117_v31 = vmul.f32 %v3110_v25, %v3098_v23 }
 0x6b0   : > { %3775 = vmatpush1.bf16.msra.mxu0 %v3774_v6  ;;  %3079 = vmatprep.mubr.f32.mxu0 %v3882_v1 }
 0x6b1   : > { %v3202_v28 = vpop.permute.xlu1 %3201  ;;  %v3200_v29 = vpop.permute.xlu0 %3199  ;;  %v3776_v30 = vpack.c.bf16 %v3118_v24, %v3116_v22  ;;  %v3778_v37 = vpack.c.bf16 %v3117_v31, %v3115_v33 }
 0x6b2   : > { %v3214_v34 = vsel %vm3205_vm10, %v3200_v29, %v3198_v41  ;;  %v3206_v52 = vsel %vm3205_vm10, %v3198_v41, %v3200_v29 }
 0x6b3   : > { %3777 = vmatprep.subr.bf16.mxu0 %v3776_v30  ;;  %v3225_v38 = vmul.f32 %v3223_v32, %v3214_v34  ;;  %v3224_v56 = vmul.f32 %v3219_v49, %v3206_v52 }
 0x6b5   : > { %v3204_v35 = vpop.permute.xlu0 %3203  ;;  %v3307_v46 = vpop.permute.xlu1 %3306 }
 0x6b6   : > { %v3215_v36 = vsel %vm3205_vm10, %v3204_v35, %v3202_v28  ;;  %v3207_v47 = vsel %vm3205_vm10, %v3202_v28, %v3204_v35 }
 0x6b7   : > { %v3227_v51 = vmul.f32 %v3223_v32, %v3215_v36  ;;  %3569 = vmatmul.mubr.msk.f32.vlgmr.msra.gmra.mrb[10].mxu0 %vm1401_vm15, %v3568_v57  ;;  %v3226_v55 = vmul.f32 %v3219_v49, %v3207_v47 }
 0x6b8   : > { %3779 = vmatpush1.bf16.msra.mxu0 %v3778_v37  ;;  %3188 = vmatprep.mubr.f32.mxu0 %v3882_v1 }
 0x6b9   : > { %v3309_v53 = vpop.permute.xlu0 %3308  ;;  %v3780_v54 = vpack.c.bf16 %v3227_v51, %v3225_v38  ;;  %v3311_v48 = vpop.permute.xlu1 %3310  ;;  %v3782_v62 = vpack.c.bf16 %v3226_v55, %v3224_v56 }
 0x6ba   : > { %v3323_v59 = vsel %vm3314_vm11, %v3309_v53, %v3307_v46  ;;  %v3315_v7 = vsel %vm3314_vm11, %v3307_v46, %v3309_v53 }
 0x6bb   : > { %3781 = vmatprep.subr.bf16.mxu0 %v3780_v54  ;;  %v3334_v0 = vmul.f32 %v3575_v58, %v3323_v59  ;;  %v3333_v4 = vmul.f32 %v3574_v5, %v3315_v7 }
 0x6bd   : > { %v3313_v61 = vpop.permute.xlu0 %3312 }
 0x6be   : > { %v3324_v63 = vsel %vm3314_vm11, %v3313_v61, %v3311_v48  ;;  %v3316_v3 = vsel %vm3314_vm11, %v3311_v48, %v3313_v61 }
 0x6bf   : > { %v3336_v43 = vmul.f32 %v3575_v58, %v3324_v63  ;;  %3571 = vmatmul.mubr.msk.f32.vlgmr.msra.gmra.mrb[10].mxu0 %vm1401_vm15, %v3570_v2  ;;  %v3335_v8 = vmul.f32 %v3574_v5, %v3316_v3 }
 0x6c0   : > { %3783 = vmatpush1.bf16.msra.mxu0 %v3782_v62  ;;  %3297 = vmatprep.mubr.f32.mxu0 %v3882_v1 }
 0x6c1   : > { %v3784_v60 = vpack.c.bf16 %v3336_v43, %v3334_v0  ;;  %v3786_v9 = vpack.c.bf16 %v3335_v8, %v3333_v4 }
 0x6c3   : > { %3785 = vmatprep.subr.bf16.mxu0 %v3784_v60 }
 0x6c7   : > { %3573 = vmatmul.mubr.msk.f32.vlgmr.msra.gmra.mrb[10].mxu0 %vm1401_vm15, %v3572_v27 }
 0x6c8   : > { %3787 = vmatpush1.bf16.msra.mxu0 %v3786_v9  ;;  %3406 = vmatprep.mubr.f32.mxu0 %v3882_v1 }
 0x6ca   : > { %v3419_v11 = vpop.permute.xlu1 %3418 }
 0x6cf   : > { %3577 = vmatmul.mubr.msk.f32.vlgmr.msra.gmra.mrb[10].mxu0 %vm1401_vm15, %v3576_v10 }
 0x7a2   : > { %v3408_v12 = vpop.f32.mrb[10].mxu0 }
 0x7a3   : > { %v3421_v13 = vadd.f32 %v3419_v11, %v3408_v12  ;;  %v3410_v14 = vpop.f32.mrb[11].mxu0 }
 0x7a4   : > { %v3422_v15 = vadd.f32 %v3419_v11, %v3410_v14 }
 0x7a5   : > { %3870 = vtanh.f32 %v3421_v13 }
 0x7a6   : > { %3872 = vtanh.f32 %v3422_v15 }
 0x7af   : > { %v3871_v16 = vpop.eup %3870 }
 0x7b0   : > { %v3873_v40 = vpop.eup %3872 }
 0x7b1   : > { %v3427_v1 = vcombine.low %v3871_v16, %v3873_v40 }
 0x7b3   : > { %3429 = vst [vmem:[%s461_s16] sm:$0x77] %v3427_v1 }
 0x7b4 PF: > { %s24_s29 = sadd.s32 1, %s3880_s29  }
 0x7b5   : > { %p21_p4 = scmp.ge.s32.totalorder %s24_s29, 4  }
 0x7b7   :  { %23 = sbr.rel (!%p21_p4) target bundleno = 1 (0x1), region = 130 }

</bundles_post_ra>
